<compile_context>
chip_gen: v5e
topology: v5e:2x2
jax: 0.10.0
libtpu: 0.0.40
codegen_flags: <defaults>
</compile_context>

<pallas_src>
import functools

import jax
import jax.numpy as jnp
from jax.experimental import pallas as pl
from jax.experimental.pallas import tpu as pltpu


_VMEM_LIMIT = 32 * 1024 * 1024  # safe on v5e/v6e/v7x; blocks are sized well below this


# ---------------------------------------------------------------------------
# Tile-size helpers
# ---------------------------------------------------------------------------
def _choose_conv_tile_h(H, W, Cin, Cout, dil, budget=6 * 1024 * 1024, m_target=2048):
    """Pick TILE_H dividing H: band + output (double-buffered) fit `budget`,
    and TILE_H * W is large enough to fill the MXU M dim."""
    Wp = W + 2 * dil

    def fits(th):
        band = (th + 2 * dil) * Wp * Cin * 4
        out = th * W * Cout * 4
        return 2 * (band + out) <= budget

    cands = [d for d in range(1, H + 1)
             if H % d == 0 and (d == H or (d * W) % 8 == 0) and fits(d)]
    if not cands:
        return H
    big = [d for d in cands if d * W >= m_target]
    return min(big) if big else max(cands)


def _choose_row_tile(rows, bytes_per_row, budget=2 * 1024 * 1024):
    tile = 1
    for d in range(1, rows + 1):
        if rows % d == 0 and d * bytes_per_row <= budget:
            tile = d
    return tile


# ---------------------------------------------------------------------------
# Conv 3x3 (dilated) + bias + ReLU kernel
# ---------------------------------------------------------------------------
def _conv3x3_relu_kernel(x_ref, w_ref, b_ref, o_ref, *, dil, tile_h, W, Cin, Cout, banded):
    # banded=True : x_ref is the (tile_h + 2*dil, Wp, Cin) zero-padded row band.
    # banded=False: x_ref is the whole (Hp, Wp, Cin) padded image; slice the band.
    # w_ref: (9, Cin, Cout) taps in (ky*3 + kx) order; b_ref: (1, Cout)
    # o_ref: (tile_h*W, Cout) flattened spatial tile (MXU M dim = tile_h*W).
    M = tile_h * W
    acc = jnp.zeros((M, Cout), jnp.float32)
    row0 = 0 if banded else pl.program_id(1) * tile_h
    for ky in range(3):
        for kx in range(3):
            if banded:
                xs = x_ref[ky * dil: ky * dil + tile_h, kx * dil: kx * dil + W, :]
            else:
                xs = x_ref[pl.ds(row0 + ky * dil, tile_h), kx * dil: kx * dil + W, :]
            acc = acc + jnp.dot(xs.reshape(M, Cin), w_ref[ky * 3 + kx],
                                preferred_element_type=jnp.float32)
    acc = acc + b_ref[...]
    o_ref[...] = jnp.maximum(acc, 0.0).astype(o_ref.dtype)  # ReLU, scale == 1.0


def conv3x3_relu(x, w, b, dilation):
    """x: (N, H, W, Cin) NHWC. w: (9, Cin, Cout). b: (1, Cout).

    Matches nn.Conv2d(k=3, padding=k//2 + dilation - 1 == dilation, dilation)
    followed by ReLU (ConvBlock / DilatedConvBlock with scale=1.0).
    """
    N, H, W, Cin = x.shape
    Cout = w.shape[-1]
    d = dilation
    tile_h = _choose_conv_tile_h(H, W, Cin, Cout, d)
    num_h = H // tile_h
    Hp, Wp = H + 2 * d, W + 2 * d
    band_h = tile_h + 2 * d

    # TODO(synk): fold the zero halo into the kernel (masked edge handling) to
    #             remove this extra activation pass over HBM per conv.
    xp = jnp.pad(x, ((0, 0), (d, d), (d, d), (0, 0)))

    kern_common = dict(dil=d, tile_h=tile_h, W=W, Cin=Cin, Cout=Cout)
    out_shape = jax.ShapeDtypeStruct((N, H * W, Cout), x.dtype)
    out_spec = pl.BlockSpec((None, tile_h * W, Cout), lambda n, h: (n, h, 0))
    w_spec = pl.BlockSpec((9, Cin, Cout), lambda n, h: (0, 0, 0))
    b_spec = pl.BlockSpec((1, Cout), lambda n, h: (0, 0))
    cp = pltpu.CompilerParams(dimension_semantics=("parallel", "parallel"),
                              vmem_limit_bytes=_VMEM_LIMIT)

    try:
        # Preferred path: overlapping row-band input blocks (bounded VMEM,
        # auto-pipelined DMA).  Batch is folded into the padded-row axis so the
        # band is a simple element-offset window of a rank-3 array.
        xflat = xp.reshape(N * Hp, Wp, Cin)
        out = pl.pallas_call(
            functools.partial(_conv3x3_relu_kernel, banded=True, **kern_common),
            out_shape=out_shape,
            grid=(N, num_h),
            in_specs=[
                pl.BlockSpec((pl.Element(band_h), Wp, Cin),
                             lambda n, h: (n * Hp + h * tile_h, 0, 0)),
                w_spec, b_spec,
            ],
            out_specs=out_spec,
            compiler_params=cp,
        )(xflat, w, b)
    except Exception:
        # Fallback: whole padded image resident per batch element (grid-invariant
        # over the row-tile axis -> DMA'd once per n), dynamic band slicing.
        out = pl.pallas_call(
            functools.partial(_conv3x3_relu_kernel, banded=False, **kern_common),
            out_shape=out_shape,
            grid=(N, num_h),
            in_specs=[
                pl.BlockSpec((None, Hp, Wp, Cin), lambda n, h: (n, 0, 0, 0)),
                w_spec, b_spec,
            ],
            out_specs=out_spec,
            compiler_params=cp,
        )(xp, w, b)

    return out.reshape(N, H, W, Cout)


# ---------------------------------------------------------------------------
# DWT / IWT kernels (polyphase split / interleave + concat fused in-kernel)
# ---------------------------------------------------------------------------
def _dwt_kernel(x_ref, o_ref, *, C):
    xb = x_ref[...]                 # (th, 2, Wh, 2C): [row-tile, row-parity, Wh, colparity*C]
    xe = xb[:, 0]                   # even input rows   (th, Wh, 2C)
    xo = xb[:, 1]                   # odd  input rows
    x1 = xe[..., :C] * 0.5          # even row, even col
    x3 = xe[..., C:] * 0.5          # even row, odd  col
    x2 = xo[..., :C] * 0.5          # odd  row, even col
    x4 = xo[..., C:] * 0.5          # odd  row, odd  col
    ll = x1 + x2 + x3 + x4
    hl = -x1 - x2 + x3 + x4
    lh = -x1 + x2 - x3 + x4
    hh = x1 - x2 - x3 + x4
    o_ref[...] = jnp.concatenate([ll, hl, lh, hh], axis=-1).astype(o_ref.dtype)


def dwt(x):
    """2D Haar DWT. x: (N, H, W, C) NHWC (even H, W) -> (N, H/2, W/2, 4C)."""
    N, H, W, C = x.shape
    Hh, Wh = H // 2, W // 2
    th = _choose_row_tile(Hh, 2 * W * C * x.dtype.itemsize)
    xr = x.reshape(N * Hh, 2, Wh, 2 * C)        # contiguous (free) reshape
    out = pl.pallas_call(
        functools.partial(_dwt_kernel, C=C),
        out_shape=jax.ShapeDtypeStruct((N * Hh, Wh, 4 * C), x.dtype),
        grid=(N * Hh // th,),
        in_specs=[pl.BlockSpec((th, 2, Wh, 2 * C), lambda i: (i, 0, 0, 0))],
        out_specs=pl.BlockSpec((th, Wh, 4 * C), lambda i: (i, 0, 0)),
        compiler_params=pltpu.CompilerParams(
            dimension_semantics=("parallel",), vmem_limit_bytes=_VMEM_LIMIT),
    )(xr)
    return out.reshape(N, Hh, Wh, 4 * C)


def _iwt_kernel(x_ref, o_ref, *, C):
    xb = x_ref[...]                 # (th, w, 4C)
    x1 = xb[..., 0 * C:1 * C] * 0.5
    x2 = xb[..., 1 * C:2 * C] * 0.5
    x3 = xb[..., 2 * C:3 * C] * 0.5
    x4 = xb[..., 3 * C:4 * C] * 0.5
    # even output rows: [even cols | odd cols], odd output rows likewise.
    even = jnp.concatenate([x1 - x2 - x3 + x4, x1 + x2 - x3 - x4], axis=-1)
    odd = jnp.concatenate([x1 - x2 + x3 - x4, x1 + x2 + x3 + x4], axis=-1)
    o_ref[:, 0, :, :] = even.astype(o_ref.dtype)
    o_ref[:, 1, :, :] = odd.astype(o_ref.dtype)


def iwt(x):
    """2D Haar IWT. x: (N, h, w, 4C) NHWC -> (N, 2h, 2w, C)."""
    N, h, w, c4 = x.shape
    C = c4 // 4
    th = _choose_row_tile(h, w * c4 * x.dtype.itemsize)
    xr = x.reshape(N * h, w, c4)                # contiguous (free) reshape
    out = pl.pallas_call(
        functools.partial(_iwt_kernel, C=C),
        out_shape=jax.ShapeDtypeStruct((N * h, 2, w, 2 * C), x.dtype),
        grid=(N * h // th,),
        in_specs=[pl.BlockSpec((th, w, c4), lambda i: (i, 0, 0))],
        out_specs=pl.BlockSpec((th, 2, w, 2 * C), lambda i: (i, 0, 0, 0)),
        compiler_params=pltpu.CompilerParams(
            dimension_semantics=("parallel",), vmem_limit_bytes=_VMEM_LIMIT),
    )(xr)
    # (N*h, 2, w, 2C) row-major == (N, 2h, 2w, C) interleaved output (free reshape).
    return out.reshape(N, 2 * h, 2 * w, C)


# ---------------------------------------------------------------------------
# MWCNN glue (padding, cropping, block application)
# ---------------------------------------------------------------------------
def pad_even(x):
    """Reflect-pad H/W (bottom/right) to even sizes. x: NHWC."""
    ph = x.shape[1] % 2
    pw = x.shape[2] % 2
    if ph or pw:
        x = jnp.pad(x, ((0, 0), (0, ph), (0, pw), (0, 0)), mode="reflect")
    return x


def crop_to_shape(x, hw):
    H, W = hw
    return x[:, :H, :W, :]


def apply_block(block, x):
    for layer in block:
        x = conv3x3_relu(x, layer["w"], layer["b"], layer["dil"])
    return x


def mwcnn_forward(params, input_nchw, res=False):
    """Forward pass matching MWCNN.forward. Input/output are NCHW."""
    x = jnp.transpose(input_nchw, (0, 2, 3, 1))      # -> NHWC
    input_nhwc = x
    num_scales = len(params["down"])
    res_values = []

    x = pad_even(x)
    for idx in range(num_scales):
        if idx == 0:
            x = pad_even(apply_block(params["down"][idx], x))
            res_values.append(x)
        elif idx == num_scales - 1:
            x = apply_block(params["down"][idx], dwt(x))
        else:
            x = pad_even(apply_block(params["down"][idx], dwt(x)))
            res_values.append(x)

    for idx in range(num_scales):
        if idx != num_scales - 1:
            tgt = res_values[num_scales - 2 - idx]
            y = iwt(apply_block(params["up"][idx], x))
            x = crop_to_shape(y, tgt.shape[1:3]) + tgt
        else:
            x = crop_to_shape(apply_block(params["up"][idx], x),
                              input_nhwc.shape[1:3])
            if res:
                x = x + input_nhwc

    return jnp.transpose(x, (0, 3, 1, 2))            # -> NCHW


# ---------------------------------------------------------------------------
# Deterministic parameter initialization (shapes mirror MWCNN.__init__)
# ---------------------------------------------------------------------------
def _conv_params(key, cin, cout):
    kw, kb = jax.random.split(key)
    scale = 1.0 / (float(cin) * 9.0) ** 0.5
    w = jax.random.normal(kw, (9, cin, cout), jnp.float32) * scale   # (ky*3+kx, Cin, Cout)
    b = jax.random.normal(kb, (1, cout), jnp.float32) * 0.01
    return w, b


def init_mwcnn_params(key, input_channels, first_conv_hidden_channels, num_scales):
    params = {"down": [], "up": []}
    keys = jax.random.split(key, num_scales * 6)
    ki = 0
    # down path: ConvBlock(cin->cout, dil 1), DilatedConvBlock(cout, dilations d)
    for idx in range(num_scales):
        cin = input_channels if idx == 0 else first_conv_hidden_channels * 2 ** (idx + 1)
        cout = first_conv_hidden_channels * 2 ** idx
        d = (2, 1) if idx != num_scales - 1 else (2, 3)
        block = []
        w, b = _conv_params(keys[ki], cin, cout); ki += 1
        block.append({"w": w, "b": b, "dil": 1})
        w, b = _conv_params(keys[ki], cout, cout); ki += 1
        block.append({"w": w, "b": b, "dil": d[0]})
        w, b = _conv_params(keys[ki], cout, cout); ki += 1
        block.append({"w": w, "b": b, "dil": d[1]})
        params["down"].append(block)
    # up path: DilatedConvBlock(cin, dilations d), ConvBlock(cin->cout, dil 1)
    for idx in range(num_scales)[::-1]:
        cin = first_conv_hidden_channels * 2 ** idx
        cout = input_channels if idx == 0 else first_conv_hidden_channels * 2 ** (idx + 1)
        d = (2, 1) if idx != num_scales - 1 else (3, 2)
        block = []
        w, b = _conv_params(keys[ki], cin, cin); ki += 1
        block.append({"w": w, "b": b, "dil": d[0]})
        w, b = _conv_params(keys[ki], cin, cin); ki += 1
        block.append({"w": w, "b": b, "dil": d[1]})
        w, b = _conv_params(keys[ki], cin, cout); ki += 1
        block.append({"w": w, "b": b, "dil": 1})
        params["up"].append(block)
    return params


# ---------------------------------------------------------------------------
if __name__ == "__main__":
    root = jax.random.PRNGKey(0)

    # small, forward-consistent configuration
    N, C_IN, H, W = 2, 4, 16, 16
    FIRST_HIDDEN = 8
    NUM_SCALES = 4

    x_nchw = jax.random.normal(root, (N, C_IN, H, W), jnp.float32)
    params = init_mwcnn_params(jax.random.fold_in(root, 1),
                               input_channels=C_IN,
                               first_conv_hidden_channels=FIRST_HIDDEN,
                               num_scales=NUM_SCALES)

    out = mwcnn_forward(params, x_nchw, res=True)
    out = jax.block_until_ready(out)

    assert out.shape == (N, C_IN, H, W), out.shape
    assert out.dtype == jnp.float32
    assert bool(jnp.all(jnp.isfinite(out)))
    print("KERNEL_OK")
</pallas_src>

<mosaic_0001>
module attributes {stable_mosaic.version = 11 : i64} {
  func.func @_conv3x3_relu_kernel(%arg0: i32, %arg1: i32, %arg2: memref<1x18x18x4xf32, #tpu.memory_space<vmem>>, %arg3: memref<9x4x8xf32, #tpu.memory_space<vmem>>, %arg4: memref<1x8xf32, #tpu.memory_space<vmem>>, %arg5: memref<1x256x8xf32, #tpu.memory_space<vmem>>) attributes {dimension_semantics = [#tpu.dimension_semantics<parallel>, #tpu.dimension_semantics<parallel>], iteration_bounds = array<i64: 2, 1>, scalar_prefetch = 0 : i64, scratch_operands = 0 : i64, tpu.core_type = #tpu.core_type<tc>, window_params = [{transform_indices = @transform_0, window_bounds = array<i64: 1, 18, 18, 4>}, {pipeline_mode = #tpu.pipeline_mode<synchronous>, transform_indices = @transform_1, window_bounds = array<i64: 9, 4, 8>}, {pipeline_mode = #tpu.pipeline_mode<synchronous>, transform_indices = @transform_2, window_bounds = array<i64: 1, 8>}, {transform_indices = @transform_3, window_bounds = array<i64: 1, 256, 8>}]} {
    %cst = arith.constant 0.000000e+00 : f32
    %0 = vector.broadcast %cst : f32 to vector<256x8xf32>
    %c16_i32 = arith.constant 16 : i32
    %1 = arith.muli %arg1, %c16_i32 : i32
    %c0_i32 = arith.constant 0 : i32
    %2 = arith.addi %1, %c0_i32 : i32
    %c0 = arith.constant 0 : index
    %3 = arith.index_cast %2 : i32 to index
    %c0_0 = arith.constant 0 : index
    %c0_1 = arith.constant 0 : index
    %4 = vector.load %arg2[%c0, %3, %c0_0, %c0_1] : memref<1x18x18x4xf32, #tpu.memory_space<vmem>>, vector<1x16x16x4xf32>
    %5 = vector.shape_cast %4 : vector<1x16x16x4xf32> to vector<16x16x4xf32>
    %6 = vector.shape_cast %5 : vector<16x16x4xf32> to vector<256x4xf32>
    %c0_2 = arith.constant 0 : index
    %c0_3 = arith.constant 0 : index
    %c0_4 = arith.constant 0 : index
    %7 = vector.load %arg3[%c0_2, %c0_3, %c0_4] : memref<9x4x8xf32, #tpu.memory_space<vmem>>, vector<1x4x8xf32>
    %8 = vector.shape_cast %7 : vector<1x4x8xf32> to vector<4x8xf32>
    %cst_5 = arith.constant dense<0.000000e+00> : vector<256x8xf32>
    %9 = tpu.matmul %6, %8, %cst_5 {dimension_numbers = #tpu.dot_dimension_numbers<[1], [0], [0], [1], [0, 0, 1, 1], [], []>} : vector<256x4xf32>, vector<4x8xf32>, vector<256x8xf32> -> vector<256x8xf32>
    %10 = arith.addf %0, %9 : vector<256x8xf32>
    %c0_i32_6 = arith.constant 0 : i32
    %11 = arith.addi %1, %c0_i32_6 : i32
    %c0_7 = arith.constant 0 : index
    %12 = arith.index_cast %11 : i32 to index
    %c1 = arith.constant 1 : index
    %c0_8 = arith.constant 0 : index
    %13 = vector.load %arg2[%c0_7, %12, %c1, %c0_8] : memref<1x18x18x4xf32, #tpu.memory_space<vmem>>, vector<1x16x16x4xf32>
    %14 = vector.shape_cast %13 : vector<1x16x16x4xf32> to vector<16x16x4xf32>
    %15 = vector.shape_cast %14 : vector<16x16x4xf32> to vector<256x4xf32>
    %c1_9 = arith.constant 1 : index
    %c0_10 = arith.constant 0 : index
    %c0_11 = arith.constant 0 : index
    %16 = vector.load %arg3[%c1_9, %c0_10, %c0_11] : memref<9x4x8xf32, #tpu.memory_space<vmem>>, vector<1x4x8xf32>
    %17 = vector.shape_cast %16 : vector<1x4x8xf32> to vector<4x8xf32>
    %cst_12 = arith.constant dense<0.000000e+00> : vector<256x8xf32>
    %18 = tpu.matmul %15, %17, %cst_12 {dimension_numbers = #tpu.dot_dimension_numbers<[1], [0], [0], [1], [0, 0, 1, 1], [], []>} : vector<256x4xf32>, vector<4x8xf32>, vector<256x8xf32> -> vector<256x8xf32>
    %19 = arith.addf %10, %18 : vector<256x8xf32>
    %c0_i32_13 = arith.constant 0 : i32
    %20 = arith.addi %1, %c0_i32_13 : i32
    %c0_14 = arith.constant 0 : index
    %21 = arith.index_cast %20 : i32 to index
    %c2 = arith.constant 2 : index
    %c0_15 = arith.constant 0 : index
    %22 = vector.load %arg2[%c0_14, %21, %c2, %c0_15] : memref<1x18x18x4xf32, #tpu.memory_space<vmem>>, vector<1x16x16x4xf32>
    %23 = vector.shape_cast %22 : vector<1x16x16x4xf32> to vector<16x16x4xf32>
    %24 = vector.shape_cast %23 : vector<16x16x4xf32> to vector<256x4xf32>
    %c2_16 = arith.constant 2 : index
    %c0_17 = arith.constant 0 : index
    %c0_18 = arith.constant 0 : index
    %25 = vector.load %arg3[%c2_16, %c0_17, %c0_18] : memref<9x4x8xf32, #tpu.memory_space<vmem>>, vector<1x4x8xf32>
    %26 = vector.shape_cast %25 : vector<1x4x8xf32> to vector<4x8xf32>
    %cst_19 = arith.constant dense<0.000000e+00> : vector<256x8xf32>
    %27 = tpu.matmul %24, %26, %cst_19 {dimension_numbers = #tpu.dot_dimension_numbers<[1], [0], [0], [1], [0, 0, 1, 1], [], []>} : vector<256x4xf32>, vector<4x8xf32>, vector<256x8xf32> -> vector<256x8xf32>
    %28 = arith.addf %19, %27 : vector<256x8xf32>
    %c1_i32 = arith.constant 1 : i32
    %29 = arith.addi %1, %c1_i32 : i32
    %c0_20 = arith.constant 0 : index
    %30 = arith.index_cast %29 : i32 to index
    %c0_21 = arith.constant 0 : index
    %c0_22 = arith.constant 0 : index
    %31 = vector.load %arg2[%c0_20, %30, %c0_21, %c0_22] : memref<1x18x18x4xf32, #tpu.memory_space<vmem>>, vector<1x16x16x4xf32>
    %32 = vector.shape_cast %31 : vector<1x16x16x4xf32> to vector<16x16x4xf32>
    %33 = vector.shape_cast %32 : vector<16x16x4xf32> to vector<256x4xf32>
    %c3 = arith.constant 3 : index
    %c0_23 = arith.constant 0 : index
    %c0_24 = arith.constant 0 : index
    %34 = vector.load %arg3[%c3, %c0_23, %c0_24] : memref<9x4x8xf32, #tpu.memory_space<vmem>>, vector<1x4x8xf32>
    %35 = vector.shape_cast %34 : vector<1x4x8xf32> to vector<4x8xf32>
    %cst_25 = arith.constant dense<0.000000e+00> : vector<256x8xf32>
    %36 = tpu.matmul %33, %35, %cst_25 {dimension_numbers = #tpu.dot_dimension_numbers<[1], [0], [0], [1], [0, 0, 1, 1], [], []>} : vector<256x4xf32>, vector<4x8xf32>, vector<256x8xf32> -> vector<256x8xf32>
    %37 = arith.addf %28, %36 : vector<256x8xf32>
    %c1_i32_26 = arith.constant 1 : i32
    %38 = arith.addi %1, %c1_i32_26 : i32
    %c0_27 = arith.constant 0 : index
    %39 = arith.index_cast %38 : i32 to index
    %c1_28 = arith.constant 1 : index
    %c0_29 = arith.constant 0 : index
    %40 = vector.load %arg2[%c0_27, %39, %c1_28, %c0_29] : memref<1x18x18x4xf32, #tpu.memory_space<vmem>>, vector<1x16x16x4xf32>
    %41 = vector.shape_cast %40 : vector<1x16x16x4xf32> to vector<16x16x4xf32>
    %42 = vector.shape_cast %41 : vector<16x16x4xf32> to vector<256x4xf32>
    %c4 = arith.constant 4 : index
    %c0_30 = arith.constant 0 : index
    %c0_31 = arith.constant 0 : index
    %43 = vector.load %arg3[%c4, %c0_30, %c0_31] : memref<9x4x8xf32, #tpu.memory_space<vmem>>, vector<1x4x8xf32>
    %44 = vector.shape_cast %43 : vector<1x4x8xf32> to vector<4x8xf32>
    %cst_32 = arith.constant dense<0.000000e+00> : vector<256x8xf32>
    %45 = tpu.matmul %42, %44, %cst_32 {dimension_numbers = #tpu.dot_dimension_numbers<[1], [0], [0], [1], [0, 0, 1, 1], [], []>} : vector<256x4xf32>, vector<4x8xf32>, vector<256x8xf32> -> vector<256x8xf32>
    %46 = arith.addf %37, %45 : vector<256x8xf32>
    %c1_i32_33 = arith.constant 1 : i32
    %47 = arith.addi %1, %c1_i32_33 : i32
    %c0_34 = arith.constant 0 : index
    %48 = arith.index_cast %47 : i32 to index
    %c2_35 = arith.constant 2 : index
    %c0_36 = arith.constant 0 : index
    %49 = vector.load %arg2[%c0_34, %48, %c2_35, %c0_36] : memref<1x18x18x4xf32, #tpu.memory_space<vmem>>, vector<1x16x16x4xf32>
    %50 = vector.shape_cast %49 : vector<1x16x16x4xf32> to vector<16x16x4xf32>
    %51 = vector.shape_cast %50 : vector<16x16x4xf32> to vector<256x4xf32>
    %c5 = arith.constant 5 : index
    %c0_37 = arith.constant 0 : index
    %c0_38 = arith.constant 0 : index
    %52 = vector.load %arg3[%c5, %c0_37, %c0_38] : memref<9x4x8xf32, #tpu.memory_space<vmem>>, vector<1x4x8xf32>
    %53 = vector.shape_cast %52 : vector<1x4x8xf32> to vector<4x8xf32>
    %cst_39 = arith.constant dense<0.000000e+00> : vector<256x8xf32>
    %54 = tpu.matmul %51, %53, %cst_39 {dimension_numbers = #tpu.dot_dimension_numbers<[1], [0], [0], [1], [0, 0, 1, 1], [], []>} : vector<256x4xf32>, vector<4x8xf32>, vector<256x8xf32> -> vector<256x8xf32>
    %55 = arith.addf %46, %54 : vector<256x8xf32>
    %c2_i32 = arith.constant 2 : i32
    %56 = arith.addi %1, %c2_i32 : i32
    %c0_40 = arith.constant 0 : index
    %57 = arith.index_cast %56 : i32 to index
    %c0_41 = arith.constant 0 : index
    %c0_42 = arith.constant 0 : index
    %58 = vector.load %arg2[%c0_40, %57, %c0_41, %c0_42] : memref<1x18x18x4xf32, #tpu.memory_space<vmem>>, vector<1x16x16x4xf32>
    %59 = vector.shape_cast %58 : vector<1x16x16x4xf32> to vector<16x16x4xf32>
    %60 = vector.shape_cast %59 : vector<16x16x4xf32> to vector<256x4xf32>
    %c6 = arith.constant 6 : index
    %c0_43 = arith.constant 0 : index
    %c0_44 = arith.constant 0 : index
    %61 = vector.load %arg3[%c6, %c0_43, %c0_44] : memref<9x4x8xf32, #tpu.memory_space<vmem>>, vector<1x4x8xf32>
    %62 = vector.shape_cast %61 : vector<1x4x8xf32> to vector<4x8xf32>
    %cst_45 = arith.constant dense<0.000000e+00> : vector<256x8xf32>
    %63 = tpu.matmul %60, %62, %cst_45 {dimension_numbers = #tpu.dot_dimension_numbers<[1], [0], [0], [1], [0, 0, 1, 1], [], []>} : vector<256x4xf32>, vector<4x8xf32>, vector<256x8xf32> -> vector<256x8xf32>
    %64 = arith.addf %55, %63 : vector<256x8xf32>
    %c2_i32_46 = arith.constant 2 : i32
    %65 = arith.addi %1, %c2_i32_46 : i32
    %c0_47 = arith.constant 0 : index
    %66 = arith.index_cast %65 : i32 to index
    %c1_48 = arith.constant 1 : index
    %c0_49 = arith.constant 0 : index
    %67 = vector.load %arg2[%c0_47, %66, %c1_48, %c0_49] : memref<1x18x18x4xf32, #tpu.memory_space<vmem>>, vector<1x16x16x4xf32>
    %68 = vector.shape_cast %67 : vector<1x16x16x4xf32> to vector<16x16x4xf32>
    %69 = vector.shape_cast %68 : vector<16x16x4xf32> to vector<256x4xf32>
    %c7 = arith.constant 7 : index
    %c0_50 = arith.constant 0 : index
    %c0_51 = arith.constant 0 : index
    %70 = vector.load %arg3[%c7, %c0_50, %c0_51] : memref<9x4x8xf32, #tpu.memory_space<vmem>>, vector<1x4x8xf32>
    %71 = vector.shape_cast %70 : vector<1x4x8xf32> to vector<4x8xf32>
    %cst_52 = arith.constant dense<0.000000e+00> : vector<256x8xf32>
    %72 = tpu.matmul %69, %71, %cst_52 {dimension_numbers = #tpu.dot_dimension_numbers<[1], [0], [0], [1], [0, 0, 1, 1], [], []>} : vector<256x4xf32>, vector<4x8xf32>, vector<256x8xf32> -> vector<256x8xf32>
    %73 = arith.addf %64, %72 : vector<256x8xf32>
    %c2_i32_53 = arith.constant 2 : i32
    %74 = arith.addi %1, %c2_i32_53 : i32
    %c0_54 = arith.constant 0 : index
    %75 = arith.index_cast %74 : i32 to index
    %c2_55 = arith.constant 2 : index
    %c0_56 = arith.constant 0 : index
    %76 = vector.load %arg2[%c0_54, %75, %c2_55, %c0_56] : memref<1x18x18x4xf32, #tpu.memory_space<vmem>>, vector<1x16x16x4xf32>
    %77 = vector.shape_cast %76 : vector<1x16x16x4xf32> to vector<16x16x4xf32>
    %78 = vector.shape_cast %77 : vector<16x16x4xf32> to vector<256x4xf32>
    %c8 = arith.constant 8 : index
    %c0_57 = arith.constant 0 : index
    %c0_58 = arith.constant 0 : index
    %79 = vector.load %arg3[%c8, %c0_57, %c0_58] : memref<9x4x8xf32, #tpu.memory_space<vmem>>, vector<1x4x8xf32>
    %80 = vector.shape_cast %79 : vector<1x4x8xf32> to vector<4x8xf32>
    %cst_59 = arith.constant dense<0.000000e+00> : vector<256x8xf32>
    %81 = tpu.matmul %78, %80, %cst_59 {dimension_numbers = #tpu.dot_dimension_numbers<[1], [0], [0], [1], [0, 0, 1, 1], [], []>} : vector<256x4xf32>, vector<4x8xf32>, vector<256x8xf32> -> vector<256x8xf32>
    %82 = arith.addf %73, %81 : vector<256x8xf32>
    %c0_60 = arith.constant 0 : index
    %c0_61 = arith.constant 0 : index
    %83 = vector.load %arg4[%c0_60, %c0_61] : memref<1x8xf32, #tpu.memory_space<vmem>>, vector<1x8xf32>
    %84 = vector.broadcast %83 : vector<1x8xf32> to vector<256x8xf32>
    %85 = arith.addf %82, %84 : vector<256x8xf32>
    %cst_62 = arith.constant 0.000000e+00 : f32
    %86 = vector.broadcast %cst_62 : f32 to vector<256x8xf32>
    %87 = arith.maximumf %85, %86 : vector<256x8xf32>
    %c0_63 = arith.constant 0 : index
    %c0_64 = arith.constant 0 : index
    %c0_65 = arith.constant 0 : index
    %88 = vector.load %arg5[%c0_63, %c0_64, %c0_65] : memref<1x256x8xf32, #tpu.memory_space<vmem>>, vector<1x256x8xf32>
    %89 = vector.shape_cast %88 : vector<1x256x8xf32> to vector<256x8xf32>
    %90 = vector.shape_cast %87 : vector<256x8xf32> to vector<1x256x8xf32>
    tpu.vector_store %arg5[%c0_63, %c0_64, %c0_65], %90 {strides = array<i32>} : memref<1x256x8xf32, #tpu.memory_space<vmem>>, vector<1x256x8xf32>,
    return
  }
  func.func @transform_0(%arg0: i32, %arg1: i32) -> (i32, i32, i32, i32) {
    %c0_i32 = arith.constant 0 : i32
    %c0_i32_0 = arith.constant 0 : i32
    %c0_i32_1 = arith.constant 0 : i32
    %c0_i32_2 = arith.constant 0 : i32
    return %arg0, %c0_i32, %c0_i32_0, %c0_i32_1 : i32, i32, i32, i32
  }
  func.func @transform_1(%arg0: i32, %arg1: i32) -> (i32, i32, i32) {
    %c0_i32 = arith.constant 0 : i32
    %c0_i32_0 = arith.constant 0 : i32
    %c0_i32_1 = arith.constant 0 : i32
    %c0_i32_2 = arith.constant 0 : i32
    return %c0_i32, %c0_i32_0, %c0_i32_1 : i32, i32, i32
  }
  func.func @transform_2(%arg0: i32, %arg1: i32) -> (i32, i32) {
    %c0_i32 = arith.constant 0 : i32
    %c0_i32_0 = arith.constant 0 : i32
    %c0_i32_1 = arith.constant 0 : i32
    return %c0_i32, %c0_i32_0 : i32, i32
  }
  func.func @transform_3(%arg0: i32, %arg1: i32) -> (i32, i32, i32) {
    %c0_i32 = arith.constant 0 : i32
    %c0_i32_0 = arith.constant 0 : i32
    return %arg0, %arg1, %c0_i32 : i32, i32, i32
  }
}

</mosaic_0001>

<bundles_post_ra>
// kernel: tpu_custom_call.1
= control target key start
LH: loop header
LB: loop body
LE: loop exit
PB: predicated region body
PF: predicated region fallthrough
CT: control target
= control target key end

     0   :  { %s3415_s12 = smov 0   ;;  %s3417_s13 = smov 0   ;;  %s4614_s0 = inlined_call_operand.vmem [shape: f32[2,18,18,4], index: 0, kind: input, shape index: {}]   ;;  %s4615_s1 = inlined_call_operand.vmem [shape: f32[9,4,8], index: 1, kind: input, shape index: {}]   ;;  %s4616_s2 = inlined_call_operand.vmem [shape: f32[1,8], index: 2, kind: input, shape index: {}]   ;;  %s4617_s3 = inlined_call_operand.vmem [shape: f32[2,256,8], index: 3, kind: output, shape index: {}]  }
   0x1   :  { %s3419_s14 = smov 0  }
   0x2 LB: > { %s25_s15 = sadd.s32 1, %s3389_s13  ;;  %p2838_p0 = scmp.ge.s32.totalorder %s3393_s14, 1  ;;  %s3393_s14 = sphi %s3419_s14, %s13_s14   ;;  %s3389_s13 = sphi %s3417_s13, %s4730_s13   ;;  %s3385_s12 = sphi %s3415_s12, %s4729_s12  }
   0x3   : > { %p27_p1 = scmp.ge.s32.totalorder %s25_s15, 2  ;;  %p151_p2 = scmp.lt.s32.totalorder %s3393_s14, 3 }
   0x5   : > { %s4732_s15 = smov (%p27_p1, %s25_s15), 0  ;;  %p152_p3 = pnand %p2838_p0, %p151_p2 }
   0x7   : > { %155 = sbr.rel (%p152_p3) target bundleno = 731 (0x2db), region = 32 }
   0xc   : > { %v2842_v0 = vld [vmem:[%s4615_s1 + $0x4] sm:$0xf]  ;;  %vm361_vm0 = vcmask 1043456   ;;  %p179_p4 = scmp.lt.s32.totalorder %s3385_s12, 1  ;;  %v2909_v1 = vld [vmem:[%s4615_s1 + $0x8] sm:$0xf] }
   0xd   : > { %3342 = vmatpush.msk.msra.mxu1 %vm361_vm0, %v2842_v0  ;;  %3343 = vmatpush.msk.msra.mxu2 %vm361_vm0, %v2842_v0  ;;  %v2975_v2 = vld [vmem:[%s4615_s1 + $0xc] sm:$0xf]  ;;  %v229_v3 = vld [vmem:[%s4615_s1] sm:$0xf]  ;;  %v3041_v4 = vld [vmem:[%s4615_s1 + $0x10] sm:$0xf] }
   0xe   : > { %s4734_s12 = smov (!%p179_p4, %s3385_s12), 1  ;;  %3344 = vmatpush.msk.msra.mxu3 %vm361_vm0, %v2842_v0  ;;  %2843 = vmatpush.msk.msra.mxu0 %vm361_vm0, %v2842_v0  ;;  %vm264_vm1 = vcmask 31744   ;;  %v3173_v25 = vld [vmem:[%s4615_s1 + $0x18] sm:$0xf]  ;;  %v3239_v26 = vld [vmem:[%s4615_s1 + $0x1c] sm:$0xf] }
   0xf   : > { %2910 = vmatpush.msk.msrb.mxu2 %vm361_vm0, %v2909_v1  ;;  %2876 = vmatpush.msk.msrb.mxu1 %vm361_vm0, %v229_v3  ;;  %s3345_s26 = smul.u32 432, %s4734_s12  ;;  %v3107_v27 = vld [vmem:[%s4615_s1 + $0x14] sm:$0xf]  ;;  %v3305_v32 = vld [vmem:[%s4615_s1 + $0x20] sm:$0xf]  ;;  %s3341_s17 = sshll.u32 %s4734_s12, 8 }
  0x10   : > { %2976 = vmatpush.msk.msrb.mxu3 %vm361_vm0, %v2975_v2  ;;  %3042 = vmatpush.msk.msrb.mxu0 %vm361_vm0, %v3041_v4  ;;  %s4368_s12 = scalar_lea.vmem %s4617_s3, %s3341_s17  ;;  %vm2710_vm2 = vcmask 64512  }
  0x11   : > { %s3462_s29 = scalar_lea.vmem %s4614_s0, %s3345_s26 }
  0x12   : > { %v3465_v5 = vld [vmem:[%s3462_s29 + $0x61] sm:$0xff]  ;;  %v3482_v9 = vld [vmem:[%s3462_s29 + $0x69] sm:$0xff]  ;;  %v3499_v13 = vld [vmem:[%s3462_s29 + $0x79] sm:$0xff] }
  0x13   : > { %v3468_v6 = vld [vmem:[%s3462_s29 + $0xc1] sm:$0xff]  ;;  %2852 = vmatmul.msk.f32.vlgmr.msra.gmra.mxu1 %vm264_vm1, %v3465_v5  ;;  %v3485_v10 = vld [vmem:[%s3462_s29 + $0xc9] sm:$0xff]  ;;  %v3502_v14 = vld [vmem:[%s3462_s29 + $0xd9] sm:$0xff] }
  0x14   : > { %v3471_v7 = vld [vmem:[%s3462_s29 + $0x121] sm:$0xff]  ;;  %2860 = vmatmul.msk.f32.vlgmr.msra.gmra.mxu2 %vm264_vm1, %v3468_v6  ;;  %v3488_v11 = vld [vmem:[%s3462_s29 + $0x129] sm:$0xff]  ;;  %v3505_v15 = vld [vmem:[%s3462_s29 + $0x139] sm:$0xff]  ;;  %3108 = vmatpush.msk.msra.mxu1 %vm361_vm0, %v3107_v27 }
  0x15   : > { %v230_v8 = vld [vmem:[%s3462_s29 + $0x1] sm:$0xff]  ;;  %2868 = vmatmul.msk.f32.vlgmr.msra.gmra.mxu3 %vm264_vm1, %v3471_v7  ;;  %v231_v12 = vld [vmem:[%s3462_s29 + $0x9] sm:$0xff]  ;;  %v232_v16 = vld [vmem:[%s3462_s29 + $0x19] sm:$0xff]  ;;  %3174 = vmatpush.msk.msra.mxu2 %vm361_vm0, %v3173_v25 }
  0x16   : > { %2844 = vmatmul.msk.f32.vlgmr.msra.gmra.mxu0 %vm264_vm1, %v230_v8  ;;  %v3516_v17 = vld [vmem:[%s3462_s29 + $0x81] sm:$0xff]  ;;  %v3533_v21 = vld [vmem:[%s3462_s29 + $0x91] sm:$0xff]  ;;  %3240 = vmatpush.msk.msra.mxu3 %vm361_vm0, %v3239_v26  ;;  %v3565_v28 = vld [vmem:[%s3462_s29 + $0x99] sm:$0xff] }
  0x17   : > { %v3519_v18 = vld [vmem:[%s3462_s29 + $0xe1] sm:$0xff]  ;;  %v3536_v22 = vld [vmem:[%s3462_s29 + $0xf1] sm:$0xff]  ;;  %v3568_v29 = vld [vmem:[%s3462_s29 + $0xf9] sm:$0xff]  ;;  %3306 = vmatpush.msk.msra.mxu0 %vm361_vm0, %v3305_v32 }
  0x18   : > { %v3522_v19 = vld [vmem:[%s3462_s29 + $0x141] sm:$0xff]  ;;  %v3539_v23 = vld [vmem:[%s3462_s29 + $0x151] sm:$0xff]  ;;  %v3571_v30 = vld [vmem:[%s3462_s29 + $0x159] sm:$0xff] }
  0x19   : > { %v233_v20 = vld [vmem:[%s3462_s29 + $0x21] sm:$0xff]  ;;  %v3542_v24 = vld [vmem:[%s3462_s29 + $0x31] sm:$0xff]  ;;  %v3574_v31 = vld [vmem:[%s3462_s29 + $0x39] sm:$0xff] }
  0x1a   : > { %v3589_v33 = vld [vmem:[%s3462_s29 + $0xa9] sm:$0xff]  ;;  %v3609_v37 = vld [vmem:[%s3462_s29 + $0xb1] sm:$0xff]  ;;  %v197_v41 = vld [vmem:[%s3462_s29] sm:$0xff] }
  0x1b   : > { %2853 = vmatmul.msk.f32.gmra.mxu1 %vm264_vm1, %v3482_v9  ;;  %v3592_v34 = vld [vmem:[%s3462_s29 + $0x109] sm:$0xff]  ;;  %v3612_v38 = vld [vmem:[%s3462_s29 + $0x111] sm:$0xff]  ;;  %v2944_v46 = vld [vmem:[%s3462_s29 + $0x20] sm:$0xff] }
  0x1c   : > { %2861 = vmatmul.msk.f32.gmra.mxu2 %vm264_vm1, %v3485_v10  ;;  %v3595_v35 = vld [vmem:[%s3462_s29 + $0x169] sm:$0xff]  ;;  %v3615_v39 = vld [vmem:[%s3462_s29 + $0x171] sm:$0xff]  ;;  %v3643_v47 = vld [vmem:[%s3462_s29 + $0x1a] sm:$0xff] }
  0x1d   : > { %2869 = vmatmul.msk.f32.gmra.mxu3 %vm264_vm1, %v3488_v11  ;;  %v3598_v36 = vld [vmem:[%s3462_s29 + $0x49] sm:$0xff]  ;;  %v3618_v40 = vld [vmem:[%s3462_s29 + $0x51] sm:$0xff]  ;;  %v3683_v53 = vld [vmem:[%s3462_s29 + $0x3a] sm:$0xff] }
  0x1e   : > { %2845 = vmatmul.msk.f32.gmra.mxu0 %vm264_vm1, %v231_v12  ;;  %v690_v42 = vld [vmem:[%s3462_s29 + $0x2] sm:$0xff]  ;;  %v2943_v43 = vld [vmem:[%s3462_s29 + $0x18] sm:$0xff]  ;;  %v691_v45 = vld [vmem:[%s3462_s29 + $0xa] sm:$0xff] }
  0x1f   : > { %v198_v44 = vld [vmem:[%s3462_s29 + $0x8] sm:$0xff]  ;;  %v3646_v48 = vld [vmem:[%s3462_s29 + $0x30] sm:$0xff]  ;;  %v3659_v50 = vld [vmem:[%s3462_s29 + $0x38] sm:$0xff] }
  0x20   : > { %v3656_v49 = vld [vmem:[%s3462_s29 + $0x22] sm:$0xff]  ;;  %v3669_v51 = vld [vmem:[%s3462_s29 + $0x32] sm:$0xff]  ;;  %v3697_v55 = vld [vmem:[%s3462_s29 + $0x4a] sm:$0xff] }
  0x21   : > { %v3672_v52 = vld [vmem:[%s3462_s29 + $0x48] sm:$0xff]  ;;  %v3686_v54 = vld [vmem:[%s3462_s29 + $0x50] sm:$0xff]  ;;  %v3700_v56 = vld [vmem:[%s3462_s29 + $0x60] sm:$0xff] }
  0x22   : > { %v3711_v57 = vld [vmem:[%s3462_s29 + $0x52] sm:$0xff]  ;;  %v3714_v58 = vld [vmem:[%s3462_s29 + $0x68] sm:$0xff]  ;;  %v3752_v3 = vld [vmem:[%s3462_s29 + $0x80] sm:$0xff] }
  0x23   : > { %2854 = vmatmul.msk.f32.gmra.mxu1 %vm264_vm1, %v3499_v13  ;;  %4643 = vst [vmem:[#allocation2_spill] sm:$0xff] %v3714_v58  ;;  %v3727_v60 = vld [vmem:[%s3462_s29 + $0x62] sm:$0xff]  ;;  %v3730_v61 = vld [vmem:[%s3462_s29 + $0x78] sm:$0xff]  ;;  %v3749_v2 = vld [vmem:[%s3462_s29 + $0x6a] sm:$0xff] }
  0x24   : > { %2862 = vmatmul.msk.f32.gmra.mxu2 %vm264_vm1, %v3502_v14  ;;  %4644 = vst [vmem:[#allocation3_spill] sm:$0xff] %v3730_v61  ;;  %v3771_v12 = vld [vmem:[%s3462_s29 + $0x7a] sm:$0xff]  ;;  %v3793_v26 = vld [vmem:[%s3462_s29 + $0x82] sm:$0xff] }
  0x25   : > { %2870 = vmatmul.msk.f32.gmra.mxu3 %vm264_vm1, %v3505_v15  ;;  %4646 = vst [vmem:[#allocation5_spill] sm:$0xff] %v3749_v2  ;;  %v3796_v27 = vld [vmem:[%s3462_s29 + $0x98] sm:$0xff] }
  0x26   : > { %2846 = vmatmul.msk.f32.gmra.mxu0 %vm264_vm1, %v232_v16  ;;  %4647 = vst [vmem:[#allocation6_spill] sm:$0xff] %v3752_v3 }
  0x27   : > { %4649 = vst [vmem:[#allocation8_spill] sm:$0xff] %v3771_v12 }
  0x28   : > { %4652 = vst [vmem:[#allocation11_spill] sm:$0xff] %v3793_v26 }
  0x29   : > { %4653 = vst [vmem:[#allocation12_spill] sm:$0xff] %v3796_v27 }
  0x2b   : > { %2855 = vmatmul.msk.f32.gmra.mxu1 %vm264_vm1, %v3516_v17 }
  0x2c   : > { %2863 = vmatmul.msk.f32.gmra.mxu2 %vm264_vm1, %v3519_v18 }
  0x2d   : > { %2871 = vmatmul.msk.f32.gmra.mxu3 %vm264_vm1, %v3522_v19 }
  0x2e   : > { %2847 = vmatmul.msk.f32.gmra.mxu0 %vm264_vm1, %v233_v20 }
  0x33   : > { %2856 = vmatmul.msk.f32.gmra.mxu1 %vm264_vm1, %v3533_v21 }
  0x34   : > { %2864 = vmatmul.msk.f32.gmra.mxu2 %vm264_vm1, %v3536_v22 }
  0x35   : > { %2872 = vmatmul.msk.f32.gmra.mxu3 %vm264_vm1, %v3539_v23 }
  0x36   : > { %2848 = vmatmul.msk.f32.gmra.mxu0 %vm264_vm1, %v3542_v24 }
  0x3b   : > { %2857 = vmatmul.msk.f32.gmra.mxu1 %vm264_vm1, %v3565_v28 }
  0x3c   : > { %2865 = vmatmul.msk.f32.gmra.mxu2 %vm264_vm1, %v3568_v29 }
  0x3d   : > { %2873 = vmatmul.msk.f32.gmra.mxu3 %vm264_vm1, %v3571_v30 }
  0x3e   : > { %2849 = vmatmul.msk.f32.gmra.mxu0 %vm264_vm1, %v3574_v31 }
  0x43   : > { %2858 = vmatmul.msk.f32.gmra.mxu1 %vm264_vm1, %v3589_v33 }
  0x44   : > { %2866 = vmatmul.msk.f32.gmra.mxu2 %vm264_vm1, %v3592_v34 }
  0x45   : > { %2874 = vmatmul.msk.f32.gmra.mxu3 %vm264_vm1, %v3595_v35 }
  0x46   : > { %2850 = vmatmul.msk.f32.gmra.mxu0 %vm264_vm1, %v3598_v36 }
  0x4b   : > { %2859 = vmatmul.msk.f32.gmra.mxu1 %vm264_vm1, %v3609_v37 }
  0x4c   : > { %2867 = vmatmul.msk.f32.gmra.mxu2 %vm264_vm1, %v3612_v38 }
  0x4d   : > { %2875 = vmatmul.msk.f32.gmra.mxu3 %vm264_vm1, %v3615_v39 }
  0x4e   : > { %2851 = vmatmul.msk.f32.gmra.mxu0 %vm264_vm1, %v3618_v40 }
  0x53   : > { %2877 = vmatmul.msk.f32.vlgmr.msrb.gmra.mxu1 %vm264_vm1, %v197_v41 }
  0x54   : > { %2911 = vmatmul.msk.f32.vlgmr.msrb.gmra.mxu2 %vm264_vm1, %v690_v42 }
  0x55   : > { %2977 = vmatmul.msk.f32.vlgmr.msrb.gmra.mxu3 %vm264_vm1, %v2943_v43 }
  0x56   : > { %3043 = vmatmul.msk.f32.vlgmr.msrb.gmra.mxu0 %vm264_vm1, %v232_v16 }
  0x5b   : > { %2878 = vmatmul.msk.f32.gmra.mxu1 %vm264_vm1, %v198_v44  ;;  %v3818_v44 = vld [vmem:[%s3462_s29 + $0xa8] sm:$0xff] }
  0x5c   : > { %2912 = vmatmul.msk.f32.gmra.mxu2 %vm264_vm1, %v691_v45  ;;  %4656 = vst [vmem:[#allocation15_spill] sm:$0xff] %v3818_v44 }
  0x5d   : > { %2978 = vmatmul.msk.f32.gmra.mxu3 %vm264_vm1, %v2944_v46 }
  0x5e   : > { %3044 = vmatmul.msk.f32.gmra.mxu0 %vm264_vm1, %v233_v20 }
  0x63   : > { %2879 = vmatmul.msk.f32.gmra.mxu1 %vm264_vm1, %v2943_v43  ;;  %v3815_v43 = vld [vmem:[%s3462_s29 + $0x92] sm:$0xff] }
  0x64   : > { %2913 = vmatmul.msk.f32.gmra.mxu2 %vm264_vm1, %v3643_v47  ;;  %4655 = vst [vmem:[#allocation14_spill] sm:$0xff] %v3815_v43 }
  0x65   : > { %2979 = vmatmul.msk.f32.gmra.mxu3 %vm264_vm1, %v3646_v48 }
  0x66   : > { %3045 = vmatmul.msk.f32.gmra.mxu0 %vm264_vm1, %v3542_v24 }
  0x6b   : > { %2880 = vmatmul.msk.f32.gmra.mxu1 %vm264_vm1, %v2944_v46 }
  0x6c   : > { %2914 = vmatmul.msk.f32.gmra.mxu2 %vm264_vm1, %v3656_v49 }
  0x6d   : > { %2980 = vmatmul.msk.f32.gmra.mxu3 %vm264_vm1, %v3659_v50 }
  0x6e   : > { %3046 = vmatmul.msk.f32.gmra.mxu0 %vm264_vm1, %v3574_v31 }
  0x73   : > { %2881 = vmatmul.msk.f32.gmra.mxu1 %vm264_vm1, %v3646_v48 }
  0x74   : > { %2915 = vmatmul.msk.f32.gmra.mxu2 %vm264_vm1, %v3669_v51 }
  0x75   : > { %2981 = vmatmul.msk.f32.gmra.mxu3 %vm264_vm1, %v3672_v52 }
  0x76   : > { %3047 = vmatmul.msk.f32.gmra.mxu0 %vm264_vm1, %v3598_v36 }
  0x7b   : > { %2882 = vmatmul.msk.f32.gmra.mxu1 %vm264_vm1, %v3659_v50 }
  0x7c   : > { %2916 = vmatmul.msk.f32.gmra.mxu2 %vm264_vm1, %v3683_v53 }
  0x7d   : > { %2982 = vmatmul.msk.f32.gmra.mxu3 %vm264_vm1, %v3686_v54 }
  0x7e   : > { %3048 = vmatmul.msk.f32.gmra.mxu0 %vm264_vm1, %v3618_v40 }
  0x83   : > { %2883 = vmatmul.msk.f32.gmra.mxu1 %vm264_vm1, %v3672_v52 }
  0x84   : > { %2917 = vmatmul.msk.f32.gmra.mxu2 %vm264_vm1, %v3697_v55 }
  0x85   : > { %2983 = vmatmul.msk.f32.gmra.mxu3 %vm264_vm1, %v3700_v56 }
  0x86   : > { %3049 = vmatmul.msk.f32.gmra.mxu0 %vm264_vm1, %v3465_v5 }
  0x8b   : > { %2884 = vmatmul.msk.f32.gmra.mxu1 %vm264_vm1, %v3686_v54 }
  0x8c   : > { %2918 = vmatmul.msk.f32.gmra.mxu2 %vm264_vm1, %v3711_v57 }
  0x8d   : > { %2984 = vmatmul.msk.f32.gmra.mxu3 %vm264_vm1, %v3714_v58 }
  0x8e   : > { %3050 = vmatmul.msk.f32.gmra.mxu0 %vm264_vm1, %v3482_v9 }
  0x90   : > { %v3724_v59 = vpop.f32.mrf.mxu1 }
  0x93   : > { %v3732_v62 = vpop.f32.mrf.mxu0  ;;  %2885 = vmatmul.msk.f32.gmra.mxu1 %vm264_vm1, %v3700_v56 }
  0x94   : > { %2919 = vmatmul.msk.f32.gmra.mxu2 %vm264_vm1, %v3727_v60 }
  0x95   : > { %2985 = vmatmul.msk.f32.gmra.mxu3 %vm264_vm1, %v3730_v61 }
  0x96   : > { %3051 = vmatmul.msk.f32.gmra.mxu0 %vm264_vm1, %v3499_v13  ;;  %v3774_v13 = vld [vmem:[%s3462_s29 + $0x90] sm:$0xff] }
  0x97   : > { %v3742_v63 = vpop.f32.mrf.mxu2  ;;  %4650 = vst [vmem:[#allocation9_spill] sm:$0xff] %v3774_v13 }
  0x98   : > { %v3744_v0 = vpop.f32.mrf.mxu3  ;;  %v3746_v1 = vpop.f32.mrf.mxu1 }
  0x99   : > { %4645 = vst [vmem:[#allocation4_spill] sm:$0xff] %v3744_v0 }
  0x9b   : > { %v3754_v4 = vpop.f32.mrf.mxu0  ;;  %2886 = vmatmul.msk.f32.gmra.mxu1 %vm264_vm1, %v3714_v58  ;;  %v3919_v58 = vld [vmem:[%s3462_s29 + $0xe0] sm:$0xff] }
  0x9c   : > { %2920 = vmatmul.msk.f32.gmra.mxu2 %vm264_vm1, %v3749_v2  ;;  %v3916_v2 = vld [vmem:[%s3462_s29 + $0xca] sm:$0xff] }
  0x9d   : > { %2986 = vmatmul.msk.f32.gmra.mxu3 %vm264_vm1, %v3752_v3 }
  0x9e   : > { %3052 = vmatmul.msk.f32.gmra.mxu0 %vm264_vm1, %v3516_v17 }
  0x9f   : > { %v3764_v5 = vpop.f32.mrf.mxu2 }
  0xa0   : > { %v3766_v8 = vpop.f32.mrf.mxu3  ;;  %v3768_v9 = vpop.f32.mrf.mxu1 }
  0xa1   : > { %4648 = vst [vmem:[#allocation7_spill] sm:$0xff] %v3766_v8  ;;  %v3840_v8 = vld [vmem:[%s3462_s29 + $0xb0] sm:$0xff] }
  0xa2   : > { %4660 = vst [vmem:[#allocation19_spill] sm:$0xff] %v3840_v8 }
  0xa3   : > { %v3776_v16 = vpop.f32.mrf.mxu0  ;;  %2887 = vmatmul.msk.f32.gmra.mxu1 %vm264_vm1, %v3730_v61  ;;  %v3904_v61 = vld [vmem:[%s3462_s29 + $0xd8] sm:$0xff] }
  0xa4   : > { %2921 = vmatmul.msk.f32.gmra.mxu2 %vm264_vm1, %v3771_v12 }
  0xa5   : > { %2987 = vmatmul.msk.f32.gmra.mxu3 %vm264_vm1, %v3774_v13 }
  0xa6   : > { %3053 = vmatmul.msk.f32.gmra.mxu0 %vm264_vm1, %v3533_v21 }
  0xa7   : > { %v3786_v17 = vpop.f32.mrf.mxu2 }
  0xa8   : > { %v3788_v20 = vpop.f32.mrf.mxu3  ;;  %v3790_v25 = vpop.f32.mrf.mxu1 }
  0xa9   : > { %4651 = vst [vmem:[#allocation10_spill] sm:$0xff] %v3788_v20  ;;  %v3837_v20 = vld [vmem:[%s3462_s29 + $0x9a] sm:$0xff] }
  0xaa   : > { %4659 = vst [vmem:[#allocation18_spill] sm:$0xff] %v3837_v20 }
  0xab   : > { %v3798_v32 = vpop.f32.mrf.mxu0  ;;  %2888 = vmatmul.msk.f32.gmra.mxu1 %vm264_vm1, %v3752_v3  ;;  %v3881_v3 = vld [vmem:[%s3462_s29 + $0xb2] sm:$0xff] }
  0xac   : > { %2922 = vmatmul.msk.f32.gmra.mxu2 %vm264_vm1, %v3793_v26  ;;  %4667 = vst [vmem:[#allocation26_spill] sm:$0xff] %v3881_v3 }
  0xad   : > { %2988 = vmatmul.msk.f32.gmra.mxu3 %vm264_vm1, %v3796_v27 }
  0xae   : > { %3054 = vmatmul.msk.f32.gmra.mxu0 %vm264_vm1, %v3565_v28 }
  0xaf   : > { %v3808_v21 = vpop.f32.mrf.mxu2 }
  0xb0   : > { %v3810_v41 = vpop.f32.mrf.mxu3  ;;  %v3812_v42 = vpop.f32.mrf.mxu1 }
  0xb1   : > { %4654 = vst [vmem:[#allocation13_spill] sm:$0xff] %v3810_v41 }
  0xb3   : > { %v3820_v45 = vpop.f32.mrf.mxu0  ;;  %2889 = vmatmul.msk.f32.gmra.mxu1 %vm264_vm1, %v3774_v13  ;;  %v3859_v13 = vld [vmem:[%s3462_s29 + $0xaa] sm:$0xff] }
  0xb4   : > { %2923 = vmatmul.msk.f32.gmra.mxu2 %vm264_vm1, %v3815_v43  ;;  %4663 = vst [vmem:[#allocation22_spill] sm:$0xff] %v3859_v13 }
  0xb5   : > { %2989 = vmatmul.msk.f32.gmra.mxu3 %vm264_vm1, %v3818_v44 }
  0xb6   : > { %3055 = vmatmul.msk.f32.gmra.mxu0 %vm264_vm1, %v3589_v33 }
  0xb7   : > { %v3830_v28 = vpop.f32.mrf.mxu2 }
  0xb8   : > { %4657 = vst [vmem:[#allocation16_spill] sm:$0xff] %v3830_v28  ;;  %v3832_v46 = vpop.f32.mrf.mxu3  ;;  %v3834_v41 = vpop.f32.mrf.mxu1 }
  0xb9   : > { %4658 = vst [vmem:[#allocation17_spill] sm:$0xff] %v3832_v46 }
  0xbb   : > { %v3842_v0 = vpop.f32.mrf.mxu0  ;;  %2890 = vmatmul.msk.f32.gmra.mxu1 %vm264_vm1, %v3796_v27  ;;  %v3862_v27 = vld [vmem:[%s3462_s29 + $0xc0] sm:$0xff] }
  0xbc   : > { %2924 = vmatmul.msk.f32.gmra.mxu2 %vm264_vm1, %v3837_v20  ;;  %4664 = vst [vmem:[#allocation23_spill] sm:$0xff] %v3862_v27 }
  0xbd   : > { %2990 = vmatmul.msk.f32.gmra.mxu3 %vm264_vm1, %v3840_v8 }
  0xbe   : > { %3056 = vmatmul.msk.f32.gmra.mxu0 %vm264_vm1, %v3609_v37 }
  0xbf   : > { %v3852_v33 = vpop.f32.mrf.mxu2 }
  0xc0   : > { %4661 = vst [vmem:[#allocation20_spill] sm:$0xff] %v3852_v33  ;;  %v3854_v46 = vpop.f32.mrf.mxu3  ;;  %v3856_v43 = vpop.f32.mrf.mxu1 }
  0xc1   : > { %4662 = vst [vmem:[#allocation21_spill] sm:$0xff] %v3854_v46 }
  0xc3   : > { %v3864_v26 = vpop.f32.mrf.mxu0  ;;  %2891 = vmatmul.msk.f32.gmra.mxu1 %vm264_vm1, %v3818_v44  ;;  %v3884_v44 = vld [vmem:[%s3462_s29 + $0xc8] sm:$0xff] }
  0xc4   : > { %2925 = vmatmul.msk.f32.gmra.mxu2 %vm264_vm1, %v3859_v13 }
  0xc5   : > { %2991 = vmatmul.msk.f32.gmra.mxu3 %vm264_vm1, %v3862_v27 }
  0xc6   : > { %3057 = vmatmul.msk.f32.gmra.mxu0 %vm264_vm1, %v3468_v6 }
  0xc7   : > { %v3874_v37 = vpop.f32.mrf.mxu2 }
  0xc8   : > { %4665 = vst [vmem:[#allocation24_spill] sm:$0xff] %v3874_v37  ;;  %v3876_v46 = vpop.f32.mrf.mxu3  ;;  %v3878_v20 = vpop.f32.mrf.mxu1  ;;  %v3901_v37 = vld [vmem:[%s3462_s29 + $0xc2] sm:$0xff] }
  0xc9   : > { %4666 = vst [vmem:[#allocation25_spill] sm:$0xff] %v3876_v46 }
  0xca   : > { %4670 = vst [vmem:[#allocation29_spill] sm:$0xff] %v3901_v37 }
  0xcb   : > { %v3886_v12 = vpop.f32.mrf.mxu0  ;;  %2892 = vmatmul.msk.f32.gmra.mxu1 %vm264_vm1, %v3840_v8 }
  0xcc   : > { %2926 = vmatmul.msk.f32.gmra.mxu2 %vm264_vm1, %v3881_v3 }
  0xcd   : > { %2992 = vmatmul.msk.f32.gmra.mxu3 %vm264_vm1, %v3884_v44 }
  0xce   : > { %3058 = vmatmul.msk.f32.gmra.mxu0 %vm264_vm1, %v3485_v10 }
  0xcf   : > { %v3896_v6 = vpop.f32.mrf.mxu2 }
  0xd0   : > { %4668 = vst [vmem:[#allocation27_spill] sm:$0xff] %v3896_v6  ;;  %v3898_v46 = vpop.f32.mrf.mxu3  ;;  %v594_v13 = vpop.f32.mrf.mxu1 }
  0xd1   : > { %4669 = vst [vmem:[#allocation28_spill] sm:$0xff] %v3898_v46  ;;  %v595_v10 = vadd.f32 %v594_v13, %v3732_v62 }
  0xd3   : > { %v1399_v8 = vpop.f32.mrf.mxu0  ;;  %2893 = vmatmul.msk.f32.gmra.mxu1 %vm264_vm1, %v3862_v27 }
  0xd4   : > { %2927 = vmatmul.msk.f32.gmra.mxu2 %vm264_vm1, %v3901_v37 }
  0xd5   : > { %2993 = vmatmul.msk.f32.gmra.mxu3 %vm264_vm1, %v3904_v61 }
  0xd6   : > { %3059 = vmatmul.msk.f32.gmra.mxu0 %vm264_vm1, %v3502_v14 }
  0xd7   : > { %v840_v46 = vpop.f32.mrf.mxu2 }
  0xd8   : > { %v936_v3 = vadd.f32 %v840_v46, %v595_v10  ;;  %v1121_v6 = vpop.f32.mrf.mxu3  ;;  %v597_v33 = vpop.f32.mrf.mxu1 }
  0xd9   : > { %v598_v14 = vadd.f32 %v597_v33, %v3754_v4 }
  0xda   : > { %v1217_v27 = vadd.f32 %v1121_v6, %v936_v3  ;;  %v3936_v6 = vld [vmem:[%s3462_s29 + $0xf0] sm:$0xff] }
  0xdb   : > { %v1402_v37 = vpop.f32.mrf.mxu0  ;;  %2894 = vmatmul.msk.f32.gmra.mxu1 %vm264_vm1, %v3884_v44 }
  0xdc   : > { %v3921_v28 = vadd.f32 %v1399_v8, %v1217_v27  ;;  %2928 = vmatmul.msk.f32.gmra.mxu2 %vm264_vm1, %v3916_v2  ;;  %v3933_v27 = vld [vmem:[%s3462_s29 + $0xda] sm:$0xff] }
  0xdd   : > { %2994 = vmatmul.msk.f32.gmra.mxu3 %vm264_vm1, %v3919_v58 }
  0xde   : > { %4671 = vst [vmem:[#allocation30_spill] sm:$0xff] %v3921_v28  ;;  %3060 = vmatmul.msk.f32.gmra.mxu0 %vm264_vm1, %v3519_v18 }
  0xdf   : > { %v843_v62 = vpop.f32.mrf.mxu2 }
  0xe0   : > { %v937_v3 = vadd.f32 %v843_v62, %v598_v14  ;;  %v1124_v13 = vpop.f32.mrf.mxu3  ;;  %v600_v8 = vpop.f32.mrf.mxu1  ;;  %v3950_v62 = vld [vmem:[%s3462_s29 + $0xe2] sm:$0xff] }
  0xe1   : > { %v601_v18 = vadd.f32 %v600_v8, %v3776_v16 }
  0xe2   : > { %v1218_v46 = vadd.f32 %v1124_v13, %v937_v3  ;;  %v3953_v13 = vld [vmem:[%s3462_s29 + $0xf8] sm:$0xff] }
  0xe3   : > { %v1405_v10 = vpop.f32.mrf.mxu0  ;;  %2895 = vmatmul.msk.f32.gmra.mxu1 %vm264_vm1, %v3904_v61 }
  0xe4   : > { %v3938_v28 = vadd.f32 %v1402_v37, %v1218_v46  ;;  %2929 = vmatmul.msk.f32.gmra.mxu2 %vm264_vm1, %v3933_v27 }
  0xe5   : > { %2995 = vmatmul.msk.f32.gmra.mxu3 %vm264_vm1, %v3936_v6 }
  0xe6   : > { %4672 = vst [vmem:[#allocation31_spill] sm:$0xff] %v3938_v28  ;;  %3061 = vmatmul.msk.f32.gmra.mxu0 %vm264_vm1, %v3536_v22 }
  0xe7   : > { %v846_v4 = vpop.f32.mrf.mxu2 }
  0xe8   : > { %v938_v33 = vadd.f32 %v846_v4, %v601_v18  ;;  %v1127_v14 = vpop.f32.mrf.mxu3  ;;  %v603_v37 = vpop.f32.mrf.mxu1  ;;  %v3967_v4 = vld [vmem:[%s3462_s29 + $0xf2] sm:$0xff] }
  0xe9   : > { %v604_v22 = vadd.f32 %v603_v37, %v3798_v32 }
  0xea   : > { %v1219_v3 = vadd.f32 %v1127_v14, %v938_v33  ;;  %v3970_v14 = vld [vmem:[%s3462_s29 + $0x108] sm:$0xff] }
  0xeb   : > { %v1408_v46 = vpop.f32.mrf.mxu0  ;;  %2896 = vmatmul.msk.f32.gmra.mxu1 %vm264_vm1, %v3919_v58 }
  0xec   : > { %v3955_v28 = vadd.f32 %v1405_v10, %v1219_v3  ;;  %2930 = vmatmul.msk.f32.gmra.mxu2 %vm264_vm1, %v3950_v62 }
  0xed   : > { %2996 = vmatmul.msk.f32.gmra.mxu3 %vm264_vm1, %v3953_v13 }
  0xee   : > { %4673 = vst [vmem:[#allocation32_spill] sm:$0xff] %v3955_v28  ;;  %3062 = vmatmul.msk.f32.gmra.mxu0 %vm264_vm1, %v3568_v29 }
  0xef   : > { %v849_v16 = vpop.f32.mrf.mxu2 }
  0xf0   : > { %v939_v8 = vadd.f32 %v849_v16, %v604_v22  ;;  %v1130_v18 = vpop.f32.mrf.mxu3  ;;  %v606_v10 = vpop.f32.mrf.mxu1  ;;  %v3984_v16 = vld [vmem:[%s3462_s29 + $0xfa] sm:$0xff] }
  0xf1   : > { %v607_v29 = vadd.f32 %v606_v10, %v3820_v45 }
  0xf2   : > { %v1220_v33 = vadd.f32 %v1130_v18, %v939_v8  ;;  %v3987_v18 = vld [vmem:[%s3462_s29 + $0x110] sm:$0xff] }
  0xf3   : > { %v1411_v3 = vpop.f32.mrf.mxu0  ;;  %2897 = vmatmul.msk.f32.gmra.mxu1 %vm264_vm1, %v3936_v6 }
  0xf4   : > { %v3972_v28 = vadd.f32 %v1408_v46, %v1220_v33  ;;  %2931 = vmatmul.msk.f32.gmra.mxu2 %vm264_vm1, %v3967_v4 }
  0xf5   : > { %2997 = vmatmul.msk.f32.gmra.mxu3 %vm264_vm1, %v3970_v14 }
  0xf6   : > { %4674 = vst [vmem:[#allocation33_spill] sm:$0xff] %v3972_v28  ;;  %3063 = vmatmul.msk.f32.gmra.mxu0 %vm264_vm1, %v3592_v34 }
  0xf7   : > { %v852_v32 = vpop.f32.mrf.mxu2 }
  0xf8   : > { %v940_v37 = vadd.f32 %v852_v32, %v607_v29  ;;  %v1133_v22 = vpop.f32.mrf.mxu3  ;;  %v609_v46 = vpop.f32.mrf.mxu1  ;;  %v4001_v32 = vld [vmem:[%s3462_s29 + $0x10a] sm:$0xff] }
  0xf9   : > { %v610_v34 = vadd.f32 %v609_v46, %v3842_v0 }
  0xfa   : > { %v1221_v8 = vadd.f32 %v1133_v22, %v940_v37  ;;  %v4004_v22 = vld [vmem:[%s3462_s29 + $0x120] sm:$0xff] }
  0xfb   : > { %v1414_v33 = vpop.f32.mrf.mxu0  ;;  %2898 = vmatmul.msk.f32.gmra.mxu1 %vm264_vm1, %v3953_v13 }
  0xfc   : > { %v3989_v28 = vadd.f32 %v1411_v3, %v1221_v8  ;;  %2932 = vmatmul.msk.f32.gmra.mxu2 %vm264_vm1, %v3984_v16 }
  0xfd   : > { %2998 = vmatmul.msk.f32.gmra.mxu3 %vm264_vm1, %v3987_v18 }
  0xfe   : > { %4675 = vst [vmem:[#allocation34_spill] sm:$0xff] %v3989_v28  ;;  %3064 = vmatmul.msk.f32.gmra.mxu0 %vm264_vm1, %v3612_v38 }
  0xff   : > { %v855_v45 = vpop.f32.mrf.mxu2 }
 0x100   : > { %v941_v10 = vadd.f32 %v855_v45, %v610_v34  ;;  %v1136_v29 = vpop.f32.mrf.mxu3  ;;  %v612_v3 = vpop.f32.mrf.mxu1  ;;  %v4018_v45 = vld [vmem:[%s3462_s29 + $0x112] sm:$0xff] }
 0x101   : > { %v613_v38 = vadd.f32 %v612_v3, %v3864_v26 }
 0x102   : > { %v1222_v37 = vadd.f32 %v1136_v29, %v941_v10  ;;  %v4021_v29 = vld [vmem:[%s3462_s29 + $0x128] sm:$0xff] }
 0x103   : > { %v1417_v8 = vpop.f32.mrf.mxu0  ;;  %2899 = vmatmul.msk.f32.gmra.mxu1 %vm264_vm1, %v3970_v14 }
 0x104   : > { %v4006_v28 = vadd.f32 %v1414_v33, %v1222_v37  ;;  %2933 = vmatmul.msk.f32.gmra.mxu2 %vm264_vm1, %v4001_v32 }
 0x105   : > { %2999 = vmatmul.msk.f32.gmra.mxu3 %vm264_vm1, %v4004_v22 }
 0x106   : > { %4676 = vst [vmem:[#allocation35_spill] sm:$0xff] %v4006_v28  ;;  %3065 = vmatmul.msk.f32.gmra.mxu0 %vm264_vm1, %v3471_v7 }
 0x107   : > { %v858_v0 = vpop.f32.mrf.mxu2 }
 0x108   : > { %v942_v46 = vadd.f32 %v858_v0, %v613_v38  ;;  %v1139_v34 = vpop.f32.mrf.mxu3  ;;  %v615_v33 = vpop.f32.mrf.mxu1  ;;  %v4035_v0 = vld [vmem:[%s3462_s29 + $0x122] sm:$0xff] }
 0x109   : > { %v616_v7 = vadd.f32 %v615_v33, %v3886_v12 }
 0x10a   : > { %v1223_v10 = vadd.f32 %v1139_v34, %v942_v46  ;;  %v4038_v34 = vld [vmem:[%s3462_s29 + $0x138] sm:$0xff] }
 0x10b   : > { %v1420_v37 = vpop.f32.mrf.mxu0  ;;  %2900 = vmatmul.msk.f32.gmra.mxu1 %vm264_vm1, %v3987_v18 }
 0x10c   : > { %v4023_v28 = vadd.f32 %v1417_v8, %v1223_v10  ;;  %2934 = vmatmul.msk.f32.gmra.mxu2 %vm264_vm1, %v4018_v45 }
 0x10d   : > { %3000 = vmatmul.msk.f32.gmra.mxu3 %vm264_vm1, %v4021_v29 }
 0x10e   : > { %4677 = vst [vmem:[#allocation36_spill] sm:$0xff] %v4023_v28  ;;  %3066 = vmatmul.msk.f32.gmra.mxu0 %vm264_vm1, %v3488_v11 }
 0x10f   : > { %v861_v26 = vpop.f32.mrf.mxu2 }
 0x110   : > { %v943_v3 = vadd.f32 %v861_v26, %v616_v7  ;;  %v1142_v38 = vpop.f32.mrf.mxu3  ;;  %v618_v8 = vpop.f32.mrf.mxu1  ;;  %v4052_v26 = vld [vmem:[%s3462_s29 + $0x12a] sm:$0xff] }
 0x111   : > { %v619_v11 = vadd.f32 %v618_v8, %v3724_v59 }
 0x112   : > { %v1224_v46 = vadd.f32 %v1142_v38, %v943_v3  ;;  %v4055_v38 = vld [vmem:[%s3462_s29 + $0x140] sm:$0xff] }
 0x113   : > { %v1423_v10 = vpop.f32.mrf.mxu0  ;;  %2901 = vmatmul.msk.f32.gmra.mxu1 %vm264_vm1, %v4004_v22 }
 0x114   : > { %v4040_v28 = vadd.f32 %v1420_v37, %v1224_v46  ;;  %2935 = vmatmul.msk.f32.gmra.mxu2 %vm264_vm1, %v4035_v0 }
 0x115   : > { %3001 = vmatmul.msk.f32.gmra.mxu3 %vm264_vm1, %v4038_v34 }
 0x116   : > { %4678 = vst [vmem:[#allocation37_spill] sm:$0xff] %v4040_v28  ;;  %3067 = vmatmul.msk.f32.gmra.mxu0 %vm264_vm1, %v3505_v15 }
 0x117   : > { %v864_v12 = vpop.f32.mrf.mxu2 }
 0x118   : > { %v944_v33 = vadd.f32 %v864_v12, %v619_v11  ;;  %v1145_v7 = vpop.f32.mrf.mxu3  ;;  %v621_v37 = vpop.f32.mrf.mxu1  ;;  %v4069_v12 = vld [vmem:[%s3462_s29 + $0x13a] sm:$0xff] }
 0x119   : > { %v622_v15 = vadd.f32 %v621_v37, %v3746_v1 }
 0x11a   : > { %v1225_v3 = vadd.f32 %v1145_v7, %v944_v33  ;;  %v4072_v7 = vld [vmem:[%s3462_s29 + $0x150] sm:$0xff] }
 0x11b   : > { %v1426_v46 = vpop.f32.mrf.mxu0  ;;  %2902 = vmatmul.msk.f32.gmra.mxu1 %vm264_vm1, %v4021_v29 }
 0x11c   : > { %v4057_v28 = vadd.f32 %v1423_v10, %v1225_v3  ;;  %2936 = vmatmul.msk.f32.gmra.mxu2 %vm264_vm1, %v4052_v26 }
 0x11d   : > { %3002 = vmatmul.msk.f32.gmra.mxu3 %vm264_vm1, %v4055_v38 }
 0x11e   : > { %4679 = vst [vmem:[#allocation38_spill] sm:$0xff] %v4057_v28  ;;  %3068 = vmatmul.msk.f32.gmra.mxu0 %vm264_vm1, %v3522_v19 }
 0x11f   : > { %v867_v59 = vpop.f32.mrf.mxu2 }
 0x120   : > { %v945_v8 = vadd.f32 %v867_v59, %v622_v15  ;;  %v1148_v11 = vpop.f32.mrf.mxu3  ;;  %v624_v10 = vpop.f32.mrf.mxu1  ;;  %v4086_v59 = vld [vmem:[%s3462_s29 + $0x142] sm:$0xff] }
 0x121   : > { %v625_v19 = vadd.f32 %v624_v10, %v3768_v9 }
 0x122   : > { %v1226_v33 = vadd.f32 %v1148_v11, %v945_v8  ;;  %v4089_v11 = vld [vmem:[%s3462_s29 + $0x158] sm:$0xff] }
 0x123   : > { %v1429_v3 = vpop.f32.mrf.mxu0  ;;  %2903 = vmatmul.msk.f32.gmra.mxu1 %vm264_vm1, %v4038_v34 }
 0x124   : > { %v4074_v28 = vadd.f32 %v1426_v46, %v1226_v33  ;;  %2937 = vmatmul.msk.f32.gmra.mxu2 %vm264_vm1, %v4069_v12 }
 0x125   : > { %3003 = vmatmul.msk.f32.gmra.mxu3 %vm264_vm1, %v4072_v7 }
 0x126   : > { %4680 = vst [vmem:[#allocation39_spill] sm:$0xff] %v4074_v28  ;;  %3069 = vmatmul.msk.f32.gmra.mxu0 %vm264_vm1, %v3539_v23 }
 0x127   : > { %v870_v1 = vpop.f32.mrf.mxu2 }
 0x128   : > { %v946_v37 = vadd.f32 %v870_v1, %v625_v19  ;;  %v1151_v15 = vpop.f32.mrf.mxu3  ;;  %v627_v46 = vpop.f32.mrf.mxu1  ;;  %v4103_v1 = vld [vmem:[%s3462_s29 + $0x152] sm:$0xff] }
 0x129   : > { %v628_v23 = vadd.f32 %v627_v46, %v3790_v25 }
 0x12a   : > { %v1227_v8 = vadd.f32 %v1151_v15, %v946_v37  ;;  %v2971_v15 = vld [vmem:[%s3462_s29 + $0x168] sm:$0xff] }
 0x12b   : > { %v1432_v33 = vpop.f32.mrf.mxu0  ;;  %2904 = vmatmul.msk.f32.gmra.mxu1 %vm264_vm1, %v4055_v38 }
 0x12c   : > { %v4091_v28 = vadd.f32 %v1429_v3, %v1227_v8  ;;  %2938 = vmatmul.msk.f32.gmra.mxu2 %vm264_vm1, %v4086_v59 }
 0x12d   : > { %3004 = vmatmul.msk.f32.gmra.mxu3 %vm264_vm1, %v4089_v11 }
 0x12e   : > { %4681 = vst [vmem:[#allocation40_spill] sm:$0xff] %v4091_v28  ;;  %3070 = vmatmul.msk.f32.gmra.mxu0 %vm264_vm1, %v3571_v30 }
 0x12f   : > { %v873_v9 = vpop.f32.mrf.mxu2 }
 0x130   : > { %v947_v10 = vadd.f32 %v873_v9, %v628_v23  ;;  %v1154_v19 = vpop.f32.mrf.mxu3  ;;  %v630_v3 = vpop.f32.mrf.mxu1 }
 0x131   : > { %v631_v30 = vadd.f32 %v630_v3, %v3812_v42 }
 0x132   : > { %v1228_v37 = vadd.f32 %v1154_v19, %v947_v10  ;;  %v2972_v19 = vld [vmem:[%s3462_s29 + $0x170] sm:$0xff] }
 0x133   : > { %v1435_v8 = vpop.f32.mrf.mxu0  ;;  %2905 = vmatmul.msk.f32.gmra.mxu1 %vm264_vm1, %v4072_v7 }
 0x134   : > { %v4106_v28 = vadd.f32 %v1432_v33, %v1228_v37  ;;  %2939 = vmatmul.msk.f32.gmra.mxu2 %vm264_vm1, %v4103_v1  ;;  %v4117_v33 = vld [vmem:[%s3462_s29 + $0x15a] sm:$0xff] }
 0x135   : > { %3005 = vmatmul.msk.f32.gmra.mxu3 %vm264_vm1, %v2971_v15  ;;  %4683 = vst [vmem:[#allocation42_spill] sm:$0xff] %v4117_v33 }
 0x136   : > { %4682 = vst [vmem:[#allocation41_spill] sm:$0xff] %v4106_v28  ;;  %3071 = vmatmul.msk.f32.gmra.mxu0 %vm264_vm1, %v3595_v35 }
 0x137   : > { %v876_v25 = vpop.f32.mrf.mxu2 }
 0x138   : > { %v948_v46 = vadd.f32 %v876_v25, %v631_v30  ;;  %v1157_v23 = vpop.f32.mrf.mxu3  ;;  %v633_v9 = vpop.f32.mrf.mxu1 }
 0x139   : > { %v634_v35 = vadd.f32 %v633_v9, %v3834_v41 }
 0x13a   : > { %v1229_v10 = vadd.f32 %v1157_v23, %v948_v46  ;;  %v2973_v23 = vld [vmem:[%s3462_s29 + $0x180] sm:$0xff] }
 0x13b   : > { %v1438_v37 = vpop.f32.mrf.mxu0  ;;  %2906 = vmatmul.msk.f32.gmra.mxu1 %vm264_vm1, %v4089_v11 }
 0x13c   : > { %v4120_v28 = vadd.f32 %v1435_v8, %v1229_v10  ;;  %2940 = vmatmul.msk.f32.gmra.mxu2 %vm264_vm1, %v4117_v33  ;;  %v4131_v8 = vld [vmem:[%s3462_s29 + $0x16a] sm:$0xff] }
 0x13d   : > { %3006 = vmatmul.msk.f32.gmra.mxu3 %vm264_vm1, %v2972_v19 }
 0x13e   : > { %4684 = vst [vmem:[#allocation43_spill] sm:$0xff] %v4120_v28  ;;  %3072 = vmatmul.msk.f32.gmra.mxu0 %vm264_vm1, %v3615_v39  ;;  %v4135_v28 = vld [vmem:[%s3462_s29 + $0x181] sm:$0xff] }
 0x13f   : > { %v879_v42 = vpop.f32.mrf.mxu2 }
 0x140   : > { %v949_v3 = vadd.f32 %v879_v42, %v634_v35  ;;  %v1160_v30 = vpop.f32.mrf.mxu3  ;;  %v636_v25 = vpop.f32.mrf.mxu1 }
 0x141   : > { %v637_v39 = vadd.f32 %v636_v25, %v3856_v43 }
 0x142   : > { %v1230_v46 = vadd.f32 %v1160_v30, %v949_v3  ;;  %v4147_v3 = vld [vmem:[%s3462_s29 + $0x172] sm:$0xff]  ;;  %v2974_v30 = vld [vmem:[%s3462_s29 + $0x188] sm:$0xff] }
 0x143   : > { %v1441_v10 = vpop.f32.mrf.mxu0  ;;  %2907 = vmatmul.msk.f32.gmra.mxu1 %vm264_vm1, %v2971_v15  ;;  %v4151_v15 = vld [vmem:[%s3462_s29 + $0x189] sm:$0xff] }
 0x144   : > { %v4137_v33 = vadd.f32 %v1438_v37, %v1230_v46  ;;  %2941 = vmatmul.msk.f32.gmra.mxu2 %vm264_vm1, %v4131_v8 }
 0x145   : > { %3007 = vmatmul.msk.f32.gmra.mxu3 %vm264_vm1, %v2973_v23 }
 0x146   : > { %4685 = vst [vmem:[#allocation44_spill] sm:$0xff] %v4137_v33  ;;  %3073 = vmatmul.msk.f32.gmra.mxu0 %vm264_vm1, %v4135_v28 }
 0x147   : > { %v882_v41 = vpop.f32.mrf.mxu2 }
 0x148   : > { %v950_v9 = vadd.f32 %v882_v41, %v637_v39  ;;  %v1163_v35 = vpop.f32.mrf.mxu3  ;;  %v639_v42 = vpop.f32.mrf.mxu1 }
 0x149   : > { %v640_v43 = vadd.f32 %v639_v42, %v3878_v20 }
 0x14a   : > { %v1231_v37 = vadd.f32 %v1163_v35, %v950_v9 }
 0x14b   : > { %v1444_v46 = vpop.f32.mrf.mxu0  ;;  %2908 = vmatmul.msk.f32.gmra.mxu1 %vm264_vm1, %v2972_v19 }
 0x14c   : > { %v4153_v33 = vadd.f32 %v1441_v10, %v1231_v37  ;;  %2942 = vmatmul.msk.f32.gmra.mxu2 %vm264_vm1, %v4147_v3 }
 0x14d   : > { %3008 = vmatmul.msk.f32.gmra.mxu3 %vm264_vm1, %v2974_v30 }
 0x14e   : > { %3074 = vmatmul.msk.f32.gmra.mxu0 %vm264_vm1, %v4151_v15 }
 0x14f   : > { %v885_v25 = vpop.f32.mrf.mxu2 }
 0x150   : > { %v951_v23 = vadd.f32 %v885_v25, %v640_v43  ;;  %v1166_v39 = vpop.f32.mrf.mxu3  ;;  %v642_v41 = vpop.f32.mrf.mxu1 }
 0x151   : > { %v643_v20 = vadd.f32 %v642_v41, %v3742_v63 }
 0x152   : > { %v1232_v9 = vadd.f32 %v1166_v39, %v951_v23 }
 0x153   : > { %v1447_v35 = vpop.f32.mrf.mxu0  ;;  %3109 = vmatmul.msk.f32.vlgmr.msra.gmra.mxu1 %vm264_vm1, %v3643_v47 }
 0x154   : > { %v4162_v10 = vadd.f32 %v1444_v46, %v1232_v9  ;;  %3175 = vmatmul.msk.f32.vlgmr.msra.gmra.mxu2 %vm264_vm1, %v3646_v48 }
 0x155   : > { %3241 = vmatmul.msk.f32.vlgmr.msra.gmra.mxu3 %vm264_vm1, %v3542_v24 }
 0x156   : > { %3307 = vmatmul.msk.f32.vlgmr.msra.gmra.mxu0 %vm264_vm1, %v3669_v51 }
 0x157   : > { %v888_v19 = vpop.f32.mrf.mxu2 }
 0x158   : > { %v952_v42 = vadd.f32 %v888_v19, %v643_v20  ;;  %v1169_v37 = vpop.f32.mrf.mxu3  ;;  %v645_v30 = vpop.f32.mrf.mxu1 }
 0x159   : > { %v646_v24 = vadd.f32 %v645_v30, %v3764_v5 }
 0x15a   : > { %v1233_v46 = vadd.f32 %v1169_v37, %v952_v42 }
 0x15b   : > { %v1450_v43 = vpop.f32.mrf.mxu0  ;;  %3110 = vmatmul.msk.f32.gmra.mxu1 %vm264_vm1, %v3656_v49 }
 0x15c   : > { %v4173_v25 = vadd.f32 %v1447_v35, %v1233_v46  ;;  %3176 = vmatmul.msk.f32.gmra.mxu2 %vm264_vm1, %v3659_v50  ;;  %v3211_v46 = vld [vmem:[%s3462_s29 + $0x61] sm:$0xff] }
 0x15d   : > { %3242 = vmatmul.msk.f32.gmra.mxu3 %vm264_vm1, %v3574_v31 }
 0x15e   : > { %3308 = vmatmul.msk.f32.gmra.mxu0 %vm264_vm1, %v3683_v53 }
 0x15f   : > { %v891_v47 = vpop.f32.mrf.mxu2 }
 0x160   : > { %v953_v48 = vadd.f32 %v891_v47, %v646_v24  ;;  %v1172_v63 = vpop.f32.mrf.mxu3  ;;  %v648_v23 = vpop.f32.mrf.mxu1 }
 0x161   : > { %v649_v31 = vadd.f32 %v648_v23, %v3786_v17  ;;  %v3212_v23 = vld [vmem:[%s3462_s29 + $0x69] sm:$0xff] }
 0x162   : > { %v1234_v39 = vadd.f32 %v1172_v63, %v953_v48 }
 0x163   : > { %v1453_v41 = vpop.f32.mrf.mxu0  ;;  %3111 = vmatmul.msk.f32.gmra.mxu1 %vm264_vm1, %v3669_v51 }
 0x164   : > { %v4184_v9 = vadd.f32 %v1450_v43, %v1234_v39  ;;  %3177 = vmatmul.msk.f32.gmra.mxu2 %vm264_vm1, %v3672_v52 }
 0x165   : > { %3243 = vmatmul.msk.f32.gmra.mxu3 %vm264_vm1, %v3598_v36 }
 0x166   : > { %3309 = vmatmul.msk.f32.gmra.mxu0 %vm264_vm1, %v3697_v55 }
 0x167   : > { %v894_v49 = vpop.f32.mrf.mxu2 }
 0x168   : > { %v954_v50 = vadd.f32 %v894_v49, %v649_v31  ;;  %v1175_v5 = vpop.f32.mrf.mxu3  ;;  %v651_v35 = vpop.f32.mrf.mxu1  ;;  %v4689_v31 = vld [vmem:[#allocation20_spill] sm:$0xff] }
 0x169   : > { %v652_v36 = vadd.f32 %v651_v35, %v3808_v21 }
 0x16a   : > { %v1235_v20 = vadd.f32 %v1175_v5, %v954_v50 }
 0x16b   : > { %v1456_v19 = vpop.f32.mrf.mxu0  ;;  %3112 = vmatmul.msk.f32.gmra.mxu1 %vm264_vm1, %v3683_v53 }
 0x16c   : > { %v4195_v42 = vadd.f32 %v1453_v41, %v1235_v20  ;;  %3178 = vmatmul.msk.f32.gmra.mxu2 %vm264_vm1, %v3686_v54 }
 0x16d   : > { %3244 = vmatmul.msk.f32.gmra.mxu3 %vm264_vm1, %v3618_v40  ;;  %v4686_v40 = vld [vmem:[#allocation16_spill] sm:$0xff] }
 0x16e   : > { %3310 = vmatmul.msk.f32.gmra.mxu0 %vm264_vm1, %v3711_v57 }
 0x16f   : > { %v897_v51 = vpop.f32.mrf.mxu2 }
 0x170   : > { %v955_v52 = vadd.f32 %v897_v51, %v652_v36  ;;  %v1178_v17 = vpop.f32.mrf.mxu3  ;;  %v654_v37 = vpop.f32.mrf.mxu1  ;;  %v3213_v36 = vld [vmem:[%s3462_s29 + $0x79] sm:$0xff] }
 0x171   : > { %v655_v54 = vadd.f32 %v654_v37, %v4686_v40  ;;  %v4692_v37 = vld [vmem:[#allocation24_spill] sm:$0xff] }
 0x172   : > { %v1236_v30 = vadd.f32 %v1178_v17, %v955_v52  ;;  %v4691_v17 = vld [vmem:[#allocation8_spill] sm:$0xff] }
 0x173   : > { %v1459_v43 = vpop.f32.mrf.mxu0  ;;  %3113 = vmatmul.msk.f32.gmra.mxu1 %vm264_vm1, %v3697_v55  ;;  %v4687_v55 = vld [vmem:[#allocation2_spill] sm:$0xff] }
 0x174   : > { %v4207_v53 = vadd.f32 %v1456_v19, %v1236_v30  ;;  %3179 = vmatmul.msk.f32.gmra.mxu2 %vm264_vm1, %v3700_v56  ;;  %v4688_v56 = vld [vmem:[#allocation5_spill] sm:$0xff] }
 0x175   : > { %3245 = vmatmul.msk.f32.gmra.mxu3 %vm264_vm1, %v3211_v46 }
 0x176   : > { %3311 = vmatmul.msk.f32.gmra.mxu0 %vm264_vm1, %v3727_v60 }
 0x177   : > { %v900_v21 = vpop.f32.mrf.mxu2 }
 0x178   : > { %v956_v24 = vadd.f32 %v900_v21, %v655_v54  ;;  %v1181_v47 = vpop.f32.mrf.mxu3  ;;  %v657_v48 = vpop.f32.mrf.mxu1 }
 0x179   : > { %v658_v49 = vadd.f32 %v657_v48, %v4689_v31 }
 0x17a   : > { %v1237_v63 = vadd.f32 %v1181_v47, %v956_v24  ;;  %v3214_v24 = vld [vmem:[%s3462_s29 + $0x81] sm:$0xff] }
 0x17b   : > { %v1462_v39 = vpop.f32.mrf.mxu0  ;;  %3114 = vmatmul.msk.f32.gmra.mxu1 %vm264_vm1, %v3711_v57  ;;  %v4690_v57 = vld [vmem:[#allocation3_spill] sm:$0xff] }
 0x17c   : > { %v4218_v41 = vadd.f32 %v1459_v43, %v1237_v63  ;;  %3180 = vmatmul.msk.f32.gmra.mxu2 %vm264_vm1, %v4687_v55  ;;  %v4694_v63 = vld [vmem:[#allocation11_spill] sm:$0xff] }
 0x17d   : > { %3246 = vmatmul.msk.f32.gmra.mxu3 %vm264_vm1, %v3212_v23  ;;  %v4695_v23 = vld [vmem:[#allocation27_spill] sm:$0xff] }
 0x17e   : > { %3312 = vmatmul.msk.f32.gmra.mxu0 %vm264_vm1, %v4688_v56 }
 0x17f   : > { %v903_v50 = vpop.f32.mrf.mxu2 }
 0x180   : > { %v957_v5 = vadd.f32 %v903_v50, %v658_v49  ;;  %v1184_v35 = vpop.f32.mrf.mxu3  ;;  %v660_v20 = vpop.f32.mrf.mxu1 }
 0x181   : > { %v661_v30 = vadd.f32 %v660_v20, %v4692_v37 }
 0x182   : > { %v1238_v19 = vadd.f32 %v1184_v35, %v957_v5  ;;  %v3215_v35 = vld [vmem:[%s3462_s29 + $0x91] sm:$0xff] }
 0x183   : > { %v1465_v51 = vpop.f32.mrf.mxu0  ;;  %3115 = vmatmul.msk.f32.gmra.mxu1 %vm264_vm1, %v3727_v60  ;;  %v4693_v60 = vld [vmem:[#allocation6_spill] sm:$0xff] }
 0x184   : > { %v4229_v52 = vadd.f32 %v1462_v39, %v1238_v19  ;;  %3181 = vmatmul.msk.f32.gmra.mxu2 %vm264_vm1, %v4690_v57 }
 0x185   : > { %3247 = vmatmul.msk.f32.gmra.mxu3 %vm264_vm1, %v3213_v36  ;;  %v4697_v36 = vld [vmem:[#allocation14_spill] sm:$0xff] }
 0x186   : > { %3313 = vmatmul.msk.f32.gmra.mxu0 %vm264_vm1, %v4691_v17 }
 0x187   : > { %v906_v46 = vpop.f32.mrf.mxu2 }
 0x188   : > { %v958_v43 = vadd.f32 %v906_v46, %v661_v30  ;;  %v1187_v40 = vpop.f32.mrf.mxu3  ;;  %v663_v54 = vpop.f32.mrf.mxu1 }
 0x189   : > { %v664_v39 = vadd.f32 %v663_v54, %v4695_v23  ;;  %v3216_v54 = vld [vmem:[%s3462_s29 + $0x99] sm:$0xff] }
 0x18a   : > { %v1239_v21 = vadd.f32 %v1187_v40, %v958_v43 }
 0x18b   : > { %v1468_v47 = vpop.f32.mrf.mxu0  ;;  %3116 = vmatmul.msk.f32.gmra.mxu1 %vm264_vm1, %v4688_v56  ;;  %v4696_v56 = vld [vmem:[#allocation9_spill] sm:$0xff] }
 0x18c   : > { %v4240_v48 = vadd.f32 %v1465_v51, %v1239_v21  ;;  %3182 = vmatmul.msk.f32.gmra.mxu2 %vm264_vm1, %v4693_v60  ;;  %v4698_v51 = vld [vmem:[#allocation4_spill] sm:$0xff]  ;;  %v4701_v60 = vld [vmem:[#allocation7_spill] sm:$0xff] }
 0x18d   : > { %3248 = vmatmul.msk.f32.gmra.mxu3 %vm264_vm1, %v3214_v24 }
 0x18e   : > { %3314 = vmatmul.msk.f32.gmra.mxu0 %vm264_vm1, %v4694_v63 }
 0x18f   : > { %v909_v55 = vpop.f32.mrf.mxu2 }
 0x190   : > { %v959_v31 = vadd.f32 %v909_v55, %v664_v39  ;;  %v1190_v49 = vpop.f32.mrf.mxu3  ;;  %v666_v50 = vpop.f32.mrf.mxu1 }
 0x191   : > { %v667_v57 = vadd.f32 %v666_v50, %v4698_v51  ;;  %v4704_v51 = vld [vmem:[#allocation10_spill] sm:$0xff] }
 0x192   : > { %v1240_v5 = vadd.f32 %v1190_v49, %v959_v31 }
 0x193   : > { %v1471_v20 = vpop.f32.mrf.mxu0  ;;  %3117 = vmatmul.msk.f32.gmra.mxu1 %vm264_vm1, %v4691_v17  ;;  %v4699_v17 = vld [vmem:[#allocation12_spill] sm:$0xff] }
 0x194   : > { %v4251_v19 = vadd.f32 %v1468_v47, %v1240_v5  ;;  %3183 = vmatmul.msk.f32.gmra.mxu2 %vm264_vm1, %v4696_v56  ;;  %v4700_v47 = vld [vmem:[#allocation18_spill] sm:$0xff]  ;;  %v3217_v5 = vld [vmem:[%s3462_s29 + $0xa9] sm:$0xff] }
 0x195   : > { %3249 = vmatmul.msk.f32.gmra.mxu3 %vm264_vm1, %v3215_v35  ;;  %v4703_v56 = vld [vmem:[#allocation22_spill] sm:$0xff] }
 0x196   : > { %3315 = vmatmul.msk.f32.gmra.mxu0 %vm264_vm1, %v4697_v36 }
 0x197   : > { %v912_v37 = vpop.f32.mrf.mxu2 }
 0x198   : > { %v960_v30 = vadd.f32 %v912_v37, %v667_v57  ;;  %v1193_v46 = vpop.f32.mrf.mxu3  ;;  %v669_v43 = vpop.f32.mrf.mxu1 }
 0x199   : > { %v670_v23 = vadd.f32 %v669_v43, %v4701_v60  ;;  %v4706_v60 = vld [vmem:[#allocation26_spill] sm:$0xff] }
 0x19a   : > { %v1241_v40 = vadd.f32 %v1193_v46, %v960_v30 }
 0x19b   : > { %v1474_v21 = vpop.f32.mrf.mxu0  ;;  %3118 = vmatmul.msk.f32.gmra.mxu1 %vm264_vm1, %v4694_v63  ;;  %v4702_v63 = vld [vmem:[#allocation15_spill] sm:$0xff] }
 0x19c   : > { %v4262_v24 = vadd.f32 %v1471_v20, %v1241_v40  ;;  %3184 = vmatmul.msk.f32.gmra.mxu2 %vm264_vm1, %v4699_v17 }
 0x19d   : > { %3250 = vmatmul.msk.f32.gmra.mxu3 %vm264_vm1, %v3216_v54  ;;  %v3218_v54 = vld [vmem:[%s3462_s29 + $0xb1] sm:$0xff] }
 0x19e   : > { %3316 = vmatmul.msk.f32.gmra.mxu0 %vm264_vm1, %v4700_v47 }
 0x19f   : > { %v915_v39 = vpop.f32.mrf.mxu2 }
 0x1a0   : > { %v961_v55 = vadd.f32 %v915_v39, %v670_v23  ;;  %v1196_v31 = vpop.f32.mrf.mxu3  ;;  %v672_v49 = vpop.f32.mrf.mxu1  ;;  %v4707_v23 = vld [vmem:[#allocation13_spill] sm:$0xff] }
 0x1a1   : > { %v673_v57 = vadd.f32 %v672_v49, %v4704_v51 }
 0x1a2   : > { %v1242_v50 = vadd.f32 %v1196_v31, %v961_v55 }
 0x1a3   : > { %v1477_v35 = vpop.f32.mrf.mxu0  ;;  %3119 = vmatmul.msk.f32.gmra.mxu1 %vm264_vm1, %v4697_v36  ;;  %v4705_v36 = vld [vmem:[#allocation19_spill] sm:$0xff] }
 0x1a4   : > { %v4273_v20 = vadd.f32 %v1474_v21, %v1242_v50  ;;  %3185 = vmatmul.msk.f32.gmra.mxu2 %vm264_vm1, %v4702_v63 }
 0x1a5   : > { %3251 = vmatmul.msk.f32.gmra.mxu3 %vm264_vm1, %v3217_v5 }
 0x1a6   : > { %3317 = vmatmul.msk.f32.gmra.mxu0 %vm264_vm1, %v4703_v56 }
 0x1a7   : > { %v918_v37 = vpop.f32.mrf.mxu2 }
 0x1a8   : > { %v962_v30 = vadd.f32 %v918_v37, %v673_v57  ;;  %v1199_v46 = vpop.f32.mrf.mxu3  ;;  %v675_v43 = vpop.f32.mrf.mxu1  ;;  %v4709_v57 = vld [vmem:[#allocation29_spill] sm:$0xff] }
 0x1a9   : > { %v676_v39 = vadd.f32 %v675_v43, %v4707_v23  ;;  %v4710_v37 = vld [vmem:[#allocation17_spill] sm:$0xff] }
 0x1aa   : > { %v1243_v40 = vadd.f32 %v1199_v46, %v962_v30 }
 0x1ab   : > { %v1480_v21 = vpop.f32.mrf.mxu0  ;;  %3120 = vmatmul.msk.f32.gmra.mxu1 %vm264_vm1, %v4700_v47  ;;  %v4708_v47 = vld [vmem:[#allocation23_spill] sm:$0xff] }
 0x1ac   : > { %v4284_v17 = vadd.f32 %v1477_v35, %v1243_v40  ;;  %3186 = vmatmul.msk.f32.gmra.mxu2 %vm264_vm1, %v4705_v36  ;;  %v3219_v35 = vld [vmem:[%s3462_s29 + $0xc1] sm:$0xff]  ;;  %v3220_v36 = vld [vmem:[%s3462_s29 + $0xc9] sm:$0xff] }
 0x1ad   : > { %3252 = vmatmul.msk.f32.gmra.mxu3 %vm264_vm1, %v3218_v54 }
 0x1ae   : > { %3318 = vmatmul.msk.f32.gmra.mxu0 %vm264_vm1, %v4706_v60 }
 0x1af   : > { %v921_v55 = vpop.f32.mrf.mxu2 }
 0x1b0   : > { %v963_v31 = vadd.f32 %v921_v55, %v676_v39  ;;  %v1202_v49 = vpop.f32.mrf.mxu3  ;;  %v678_v50 = vpop.f32.mrf.mxu1 }
 0x1b1   : > { %v679_v30 = vadd.f32 %v678_v50, %v4710_v37 }
 0x1b2   : > { %v1244_v5 = vadd.f32 %v1202_v49, %v963_v31 }
 0x1b3   : > { %v1483_v63 = vpop.f32.mrf.mxu0  ;;  %3121 = vmatmul.msk.f32.gmra.mxu1 %vm264_vm1, %v4703_v56  ;;  %v4711_v56 = vld [vmem:[#allocation21_spill] sm:$0xff] }
 0x1b4   : > { %v4295_v51 = vadd.f32 %v1480_v21, %v1244_v5  ;;  %3187 = vmatmul.msk.f32.gmra.mxu2 %vm264_vm1, %v4708_v47 }
 0x1b5   : > { %3253 = vmatmul.msk.f32.gmra.mxu3 %vm264_vm1, %v3219_v35 }
 0x1b6   : > { %3319 = vmatmul.msk.f32.gmra.mxu0 %vm264_vm1, %v4709_v57 }
 0x1b7   : > { %v924_v46 = vpop.f32.mrf.mxu2 }
 0x1b8   : > { %v964_v43 = vadd.f32 %v924_v46, %v679_v30  ;;  %v1205_v40 = vpop.f32.mrf.mxu3  ;;  %v681_v54 = vpop.f32.mrf.mxu1 }
 0x1b9   : > { %v682_v55 = vadd.f32 %v681_v54, %v4711_v56 }
 0x1ba   : > { %v1245_v21 = vadd.f32 %v1205_v40, %v964_v43 }
 0x1bb   : > { %v1486_v23 = vpop.f32.mrf.mxu0  ;;  %3122 = vmatmul.msk.f32.gmra.mxu1 %vm264_vm1, %v4706_v60 }
 0x1bc   : > { %v4306_v39 = vadd.f32 %v1483_v63, %v1245_v21  ;;  %3188 = vmatmul.msk.f32.gmra.mxu2 %vm264_vm1, %v3884_v44  ;;  %v3221_v63 = vld [vmem:[%s3462_s29 + $0xd9] sm:$0xff]  ;;  %v3222_v21 = vld [vmem:[%s3462_s29 + $0xe1] sm:$0xff] }
 0x1bd   : > { %3254 = vmatmul.msk.f32.gmra.mxu3 %vm264_vm1, %v3220_v36  ;;  %v4712_v44 = vld [vmem:[#allocation25_spill] sm:$0xff] }
 0x1be   : > { %3320 = vmatmul.msk.f32.gmra.mxu0 %vm264_vm1, %v3916_v2 }
 0x1bf   : > { %v927_v31 = vpop.f32.mrf.mxu2 }
 0x1c0   : > { %v965_v49 = vadd.f32 %v927_v31, %v682_v55  ;;  %v1208_v50 = vpop.f32.mrf.mxu3  ;;  %v684_v5 = vpop.f32.mrf.mxu1 }
 0x1c1   : > { %v685_v60 = vadd.f32 %v684_v5, %v4712_v44  ;;  %v3223_v5 = vld [vmem:[%s3462_s29 + $0xf1] sm:$0xff] }
 0x1c2   : > { %v1246_v35 = vadd.f32 %v1208_v50, %v965_v49 }
 0x1c3   : > { %v1489_v47 = vpop.f32.mrf.mxu0  ;;  %3123 = vmatmul.msk.f32.gmra.mxu1 %vm264_vm1, %v4709_v57 }
 0x1c4   : > { %v4317_v37 = vadd.f32 %v1486_v23, %v1246_v35  ;;  %3189 = vmatmul.msk.f32.gmra.mxu2 %vm264_vm1, %v3904_v61  ;;  %v4713_v61 = vld [vmem:[#allocation28_spill] sm:$0xff] }
 0x1c5   : > { %3255 = vmatmul.msk.f32.gmra.mxu3 %vm264_vm1, %v3221_v63 }
 0x1c6   : > { %3321 = vmatmul.msk.f32.gmra.mxu0 %vm264_vm1, %v3933_v27 }
 0x1c7   : > { %v930_v30 = vpop.f32.mrf.mxu2 }
 0x1c8   : > { %v966_v46 = vadd.f32 %v930_v30, %v685_v60  ;;  %v1211_v43 = vpop.f32.mrf.mxu3  ;;  %v687_v40 = vpop.f32.mrf.mxu1 }
 0x1c9   : > { %v688_v57 = vadd.f32 %v687_v40, %v4713_v61 }
 0x1ca   : > { %v1247_v54 = vadd.f32 %v1211_v43, %v966_v46  ;;  %v4352_v43 = vld [vmem:[%s4616_s2] ss:$0 sm:$0xff] }
 0x1cb   : > { %v1492_v36 = vpop.f32.mrf.mxu0  ;;  %3124 = vmatmul.msk.f32.gmra.mxu1 %vm264_vm1, %v3916_v2 }
 0x1cc   : > { %v4328_v23 = vadd.f32 %v1489_v47, %v1247_v54  ;;  %3190 = vmatmul.msk.f32.gmra.mxu2 %vm264_vm1, %v3919_v58  ;;  %v4714_v58 = vld [vmem:[#allocation30_spill] sm:$0xff]  ;;  %v4715_v54 = vld [vmem:[#allocation31_spill] sm:$0xff] }
 0x1cd   : > { %3256 = vmatmul.msk.f32.gmra.mxu3 %vm264_vm1, %v3222_v21 }
 0x1ce   : > { %3322 = vmatmul.msk.f32.gmra.mxu0 %vm264_vm1, %v3950_v62 }
 0x1cf   : > { %v933_v56 = vpop.f32.mrf.mxu2 }
 0x1d0   : > { %v967_v55 = vadd.f32 %v933_v56, %v688_v57  ;;  %v1214_v31 = vpop.f32.mrf.mxu3  ;;  %v1677_v49 = vpop.f32.mrf.mxu1 }
 0x1d1   : > { %v1773_v63 = vadd.f32 %v1677_v49, %v4714_v58 }
 0x1d2   : > { %v1248_v50 = vadd.f32 %v1214_v31, %v967_v55  ;;  %v3225_v31 = vld [vmem:[%s3462_s29 + $0x109] sm:$0xff] }
 0x1d3   : > { %v2514_v35 = vpop.f32.mrf.mxu0  ;;  %3125 = vmatmul.msk.f32.gmra.mxu1 %vm264_vm1, %v3933_v27  ;;  %v3224_v27 = vld [vmem:[%s3462_s29 + $0xf9] sm:$0xff] }
 0x1d4   : > { %v4339_v2 = vadd.f32 %v1492_v36, %v1248_v50  ;;  %3191 = vmatmul.msk.f32.gmra.mxu2 %vm264_vm1, %v3936_v6 }
 0x1d5   : > { %3257 = vmatmul.msk.f32.gmra.mxu3 %vm264_vm1, %v3223_v5  ;;  %v4716_v5 = vld [vmem:[#allocation32_spill] sm:$0xff] }
 0x1d6   : > { %3323 = vmatmul.msk.f32.gmra.mxu0 %vm264_vm1, %v3967_v4 }
 0x1d7   : > { %v1958_v47 = vpop.f32.mrf.mxu2 }
 0x1d8   : > { %v2054_v44 = vadd.f32 %v1958_v47, %v1773_v63  ;;  %v2236_v60 = vpop.f32.mrf.mxu3  ;;  %v1680_v30 = vpop.f32.mrf.mxu1 }
 0x1d9   : > { %v1774_v21 = vadd.f32 %v1680_v30, %v4715_v54 }
 0x1da   : > { %v2332_v46 = vadd.f32 %v2236_v60, %v2054_v44 }
 0x1db   : > { %v2517_v40 = vpop.f32.mrf.mxu0  ;;  %3126 = vmatmul.msk.f32.gmra.mxu1 %vm264_vm1, %v3950_v62 }
 0x1dc   : > { %v2610_v6 = vadd.f32 %v2514_v35, %v2332_v46  ;;  %3192 = vmatmul.msk.f32.gmra.mxu2 %vm264_vm1, %v3953_v13  ;;  %v3226_v46 = vld [vmem:[%s3462_s29 + $0x111] sm:$0xff] }
 0x1dd   : > { %3258 = vmatmul.msk.f32.gmra.mxu3 %vm264_vm1, %v3224_v27 }
 0x1de   : > { %3324 = vmatmul.msk.f32.gmra.mxu0 %vm264_vm1, %v3984_v16  ;;  %v2646_v36 = vadd.f32 %v4352_v43, %v2610_v6 }
 0x1df   : > { %v1961_v62 = vpop.f32.mrf.mxu2 }
 0x1e0   : > { %v2678_v61 = vmax.f32 %v2646_v36, 0.0  ;;  %v2055_v57 = vadd.f32 %v1961_v62, %v1774_v21  ;;  %v2239_v13 = vpop.f32.mrf.mxu3  ;;  %v1683_v56 = vpop.f32.mrf.mxu1 }
 0x1e1   : > { %v1775_v35 = vadd.f32 %v1683_v56, %v4716_v5 }
 0x1e2   : > { %2711 = vst.msk [vmem:[%s4368_s12] sm:$0xff] %vm2710_vm2, %v2678_v61  ;;  %v2333_v55 = vadd.f32 %v2239_v13, %v2055_v57  ;;  %v3227_v13 = vld [vmem:[%s3462_s29 + $0x121] sm:$0xff] }
 0x1e3   : > { %v2520_v49 = vpop.f32.mrf.mxu0  ;;  %3127 = vmatmul.msk.f32.gmra.mxu1 %vm264_vm1, %v3967_v4 }
 0x1e4   : > { %v2611_v50 = vadd.f32 %v2517_v40, %v2333_v55  ;;  %3193 = vmatmul.msk.f32.gmra.mxu2 %vm264_vm1, %v3970_v14  ;;  %v4717_v40 = vld [vmem:[#allocation33_spill] sm:$0xff]  ;;  %v4718_v55 = vld [vmem:[#allocation34_spill] sm:$0xff] }
 0x1e5   : > { %3259 = vmatmul.msk.f32.gmra.mxu3 %vm264_vm1, %v3225_v31 }
 0x1e6   : > { %3325 = vmatmul.msk.f32.gmra.mxu0 %vm264_vm1, %v4001_v32  ;;  %v2647_v58 = vadd.f32 %v4352_v43, %v2611_v50 }
 0x1e7   : > { %v1964_v63 = vpop.f32.mrf.mxu2 }
 0x1e8   : > { %v2679_v47 = vmax.f32 %v2647_v58, 0.0  ;;  %v2056_v44 = vadd.f32 %v1964_v63, %v1775_v35  ;;  %v2242_v60 = vpop.f32.mrf.mxu3  ;;  %v1686_v30 = vpop.f32.mrf.mxu1 }
 0x1e9   : > { %v1776_v6 = vadd.f32 %v1686_v30, %v4717_v40 }
 0x1ea   : > { %2712 = vst.msk [vmem:[%s4368_s12 + $0x8] sm:$0xff] %vm2710_vm2, %v2679_v47  ;;  %v2334_v4 = vadd.f32 %v2242_v60, %v2056_v44  ;;  %v3228_v47 = vld [vmem:[%s3462_s29 + $0x129] sm:$0xff] }
 0x1eb   : > { %v2523_v14 = vpop.f32.mrf.mxu0  ;;  %3128 = vmatmul.msk.f32.gmra.mxu1 %vm264_vm1, %v3984_v16  ;;  %v4719_v60 = vld [vmem:[#allocation35_spill] sm:$0xff] }
 0x1ec   : > { %v2612_v27 = vadd.f32 %v2520_v49, %v2334_v4  ;;  %3194 = vmatmul.msk.f32.gmra.mxu2 %vm264_vm1, %v3987_v18 }
 0x1ed   : > { %3260 = vmatmul.msk.f32.gmra.mxu3 %vm264_vm1, %v3226_v46 }
 0x1ee   : > { %3326 = vmatmul.msk.f32.gmra.mxu0 %vm264_vm1, %v4018_v45  ;;  %v2648_v54 = vadd.f32 %v4352_v43, %v2612_v27 }
 0x1ef   : > { %v1967_v21 = vpop.f32.mrf.mxu2 }
 0x1f0   : > { %v2680_v36 = vmax.f32 %v2648_v54, 0.0  ;;  %v2057_v62 = vadd.f32 %v1967_v21, %v1776_v6  ;;  %v2245_v61 = vpop.f32.mrf.mxu3  ;;  %v1689_v57 = vpop.f32.mrf.mxu1  ;;  %v3229_v54 = vld [vmem:[%s3462_s29 + $0x139] sm:$0xff] }
 0x1f1   : > { %v1777_v31 = vadd.f32 %v1689_v57, %v4718_v55  ;;  %v3230_v55 = vld [vmem:[%s3462_s29 + $0x141] sm:$0xff] }
 0x1f2   : > { %2713 = vst.msk [vmem:[%s4368_s12 + $0x10] sm:$0xff] %vm2710_vm2, %v2680_v36  ;;  %v2335_v16 = vadd.f32 %v2245_v61, %v2057_v62  ;;  %v4720_v36 = vld [vmem:[#allocation36_spill] sm:$0xff] }
 0x1f3   : > { %v2526_v18 = vpop.f32.mrf.mxu0  ;;  %3129 = vmatmul.msk.f32.gmra.mxu1 %vm264_vm1, %v4001_v32 }
 0x1f4   : > { %v2613_v56 = vadd.f32 %v2523_v14, %v2335_v16  ;;  %3195 = vmatmul.msk.f32.gmra.mxu2 %vm264_vm1, %v4004_v22 }
 0x1f5   : > { %3261 = vmatmul.msk.f32.gmra.mxu3 %vm264_vm1, %v3227_v13 }
 0x1f6   : > { %3327 = vmatmul.msk.f32.gmra.mxu0 %vm264_vm1, %v4035_v0  ;;  %v2649_v49 = vadd.f32 %v4352_v43, %v2613_v56 }
 0x1f7   : > { %v1970_v50 = vpop.f32.mrf.mxu2 }
 0x1f8   : > { %v2681_v5 = vmax.f32 %v2649_v49, 0.0  ;;  %v2058_v35 = vadd.f32 %v1970_v50, %v1777_v31  ;;  %v2248_v58 = vpop.f32.mrf.mxu3  ;;  %v1692_v63 = vpop.f32.mrf.mxu1  ;;  %v4721_v49 = vld [vmem:[#allocation37_spill] sm:$0xff] }
 0x1f9   : > { %v1778_v30 = vadd.f32 %v1692_v63, %v4719_v60  ;;  %v4722_v60 = vld [vmem:[#allocation38_spill] sm:$0xff] }
 0x1fa   : > { %2714 = vst.msk [vmem:[%s4368_s12 + $0x18] sm:$0xff] %vm2710_vm2, %v2681_v5  ;;  %v2336_v32 = vadd.f32 %v2248_v58, %v2058_v35 }
 0x1fb   : > { %v2529_v22 = vpop.f32.mrf.mxu0  ;;  %3130 = vmatmul.msk.f32.gmra.mxu1 %vm264_vm1, %v4018_v45 }
 0x1fc   : > { %v2614_v44 = vadd.f32 %v2526_v18, %v2336_v32  ;;  %3196 = vmatmul.msk.f32.gmra.mxu2 %vm264_vm1, %v4021_v29 }
 0x1fd   : > { %3262 = vmatmul.msk.f32.gmra.mxu3 %vm264_vm1, %v3228_v47 }
 0x1fe   : > { %3328 = vmatmul.msk.f32.gmra.mxu0 %vm264_vm1, %v4052_v26  ;;  %v2650_v4 = vadd.f32 %v4352_v43, %v2614_v44 }
 0x1ff   : > { %v1973_v46 = vpop.f32.mrf.mxu2 }
 0x200   : > { %v2682_v14 = vmax.f32 %v2650_v4, 0.0  ;;  %v2059_v27 = vadd.f32 %v1973_v46, %v1778_v30  ;;  %v2251_v40 = vpop.f32.mrf.mxu3  ;;  %v1695_v6 = vpop.f32.mrf.mxu1 }
 0x201   : > { %v1779_v62 = vadd.f32 %v1695_v6, %v4720_v36 }
 0x202   : > { %2715 = vst.msk [vmem:[%s4368_s12 + $0x20] sm:$0xff] %vm2710_vm2, %v2682_v14  ;;  %v2337_v45 = vadd.f32 %v2251_v40, %v2059_v27 }
 0x203   : > { %v2532_v29 = vpop.f32.mrf.mxu0  ;;  %3131 = vmatmul.msk.f32.gmra.mxu1 %vm264_vm1, %v4035_v0 }
 0x204   : > { %v2615_v21 = vadd.f32 %v2529_v22, %v2337_v45  ;;  %3197 = vmatmul.msk.f32.gmra.mxu2 %vm264_vm1, %v4038_v34  ;;  %v3231_v22 = vld [vmem:[%s3462_s29 + $0x151] sm:$0xff] }
 0x205   : > { %3263 = vmatmul.msk.f32.gmra.mxu3 %vm264_vm1, %v3229_v54 }
 0x206   : > { %3329 = vmatmul.msk.f32.gmra.mxu0 %vm264_vm1, %v4069_v12  ;;  %v2651_v61 = vadd.f32 %v4352_v43, %v2615_v21 }
 0x207   : > { %v1976_v57 = vpop.f32.mrf.mxu2 }
 0x208   : > { %v2683_v16 = vmax.f32 %v2651_v61, 0.0  ;;  %v2060_v13 = vadd.f32 %v1976_v57, %v1779_v62  ;;  %v2254_v18 = vpop.f32.mrf.mxu3  ;;  %v1698_v56 = vpop.f32.mrf.mxu1 }
 0x209   : > { %v1780_v50 = vadd.f32 %v1698_v56, %v4721_v49  ;;  %v3167_v56 = vld [vmem:[%s3462_s29 + $0x168] sm:$0xff] }
 0x20a   : > { %2716 = vst.msk [vmem:[%s4368_s12 + $0x28] sm:$0xff] %vm2710_vm2, %v2683_v16  ;;  %v2338_v0 = vadd.f32 %v2254_v18, %v2060_v13  ;;  %v3101_v18 = vld [vmem:[%s3462_s29 + $0x152] sm:$0xff] }
 0x20b   : > { %v2535_v34 = vpop.f32.mrf.mxu0  ;;  %3132 = vmatmul.msk.f32.gmra.mxu1 %vm264_vm1, %v4052_v26 }
 0x20c   : > { %v2616_v31 = vadd.f32 %v2532_v29, %v2338_v0  ;;  %3198 = vmatmul.msk.f32.gmra.mxu2 %vm264_vm1, %v4055_v38  ;;  %v4724_v29 = vld [vmem:[#allocation39_spill] sm:$0xff] }
 0x20d   : > { %3264 = vmatmul.msk.f32.gmra.mxu3 %vm264_vm1, %v3230_v55 }
 0x20e   : > { %3330 = vmatmul.msk.f32.gmra.mxu0 %vm264_vm1, %v4086_v59  ;;  %v2652_v5 = vadd.f32 %v4352_v43, %v2616_v31 }
 0x20f   : > { %v1979_v35 = vpop.f32.mrf.mxu2 }
 0x210   : > { %v2684_v58 = vmax.f32 %v2652_v5, 0.0  ;;  %v2061_v63 = vadd.f32 %v1979_v35, %v1780_v50  ;;  %v2257_v32 = vpop.f32.mrf.mxu3  ;;  %v1701_v47 = vpop.f32.mrf.mxu1 }
 0x211   : > { %v1781_v30 = vadd.f32 %v1701_v47, %v4722_v60  ;;  %v3168_v47 = vld [vmem:[%s3462_s29 + $0x170] sm:$0xff] }
 0x212   : > { %2717 = vst.msk [vmem:[%s4368_s12 + $0x30] sm:$0xff] %vm2710_vm2, %v2684_v58  ;;  %v2339_v26 = vadd.f32 %v2257_v32, %v2061_v63  ;;  %v3102_v32 = vld [vmem:[%s3462_s29 + $0x15a] sm:$0xff] }
 0x213   : > { %v2538_v38 = vpop.f32.mrf.mxu0  ;;  %3133 = vmatmul.msk.f32.gmra.mxu1 %vm264_vm1, %v4069_v12 }
 0x214   : > { %v2617_v44 = vadd.f32 %v2535_v34, %v2339_v26  ;;  %3199 = vmatmul.msk.f32.gmra.mxu2 %vm264_vm1, %v4072_v7  ;;  %v3232_v7 = vld [vmem:[%s3462_s29 + $0x159] sm:$0xff]  ;;  %v4725_v34 = vld [vmem:[#allocation40_spill] sm:$0xff] }
 0x215   : > { %3265 = vmatmul.msk.f32.gmra.mxu3 %vm264_vm1, %v3231_v22  ;;  %v3234_v22 = vld [vmem:[%s3462_s29 + $0x171] sm:$0xff] }
 0x216   : > { %3331 = vmatmul.msk.f32.gmra.mxu0 %vm264_vm1, %v4103_v1  ;;  %v2653_v4 = vadd.f32 %v4352_v43, %v2617_v44  ;;  %v4723_v1 = vld [vmem:[#allocation42_spill] sm:$0xff]  ;;  %v4726_v44 = vld [vmem:[#allocation41_spill] sm:$0xff] }
 0x217   : > { %v1982_v46 = vpop.f32.mrf.mxu2 }
 0x218   : > { %v2685_v14 = vmax.f32 %v2653_v4, 0.0  ;;  %v2062_v27 = vadd.f32 %v1982_v46, %v1781_v30  ;;  %v2260_v40 = vpop.f32.mrf.mxu3  ;;  %v1704_v6 = vpop.f32.mrf.mxu1 }
 0x219   : > { %v1782_v21 = vadd.f32 %v1704_v6, %v4724_v29  ;;  %v3103_v6 = vld [vmem:[%s3462_s29 + $0x16a] sm:$0xff] }
 0x21a   : > { %2718 = vst.msk [vmem:[%s4368_s12 + $0x38] sm:$0xff] %vm2710_vm2, %v2685_v14  ;;  %v2340_v12 = vadd.f32 %v2260_v40, %v2062_v27 }
 0x21b   : > { %v2541_v45 = vpop.f32.mrf.mxu0  ;;  %3134 = vmatmul.msk.f32.gmra.mxu1 %vm264_vm1, %v4086_v59 }
 0x21c   : > { %v2618_v54 = vadd.f32 %v2538_v38, %v2340_v12  ;;  %3200 = vmatmul.msk.f32.gmra.mxu2 %vm264_vm1, %v4089_v11  ;;  %v3233_v11 = vld [vmem:[%s3462_s29 + $0x169] sm:$0xff]  ;;  %v3169_v12 = vld [vmem:[%s3462_s29 + $0x180] sm:$0xff] }
 0x21d   : > { %3266 = vmatmul.msk.f32.gmra.mxu3 %vm264_vm1, %v3232_v7 }
 0x21e   : > { %3332 = vmatmul.msk.f32.gmra.mxu0 %vm264_vm1, %v4723_v1  ;;  %v2654_v36 = vadd.f32 %v4352_v43, %v2618_v54  ;;  %v3301_v54 = vld [vmem:[%s3462_s29 + $0x182] sm:$0xff] }
 0x21f   : > { %v1985_v62 = vpop.f32.mrf.mxu2  ;;  %v4727_v1 = vld [vmem:[#allocation43_spill] sm:$0xff] }
 0x220   : > { %v2686_v61 = vmax.f32 %v2654_v36, 0.0  ;;  %v2063_v57 = vadd.f32 %v1985_v62, %v1782_v21  ;;  %v2263_v16 = vpop.f32.mrf.mxu3  ;;  %v1707_v13 = vpop.f32.mrf.mxu1 }
 0x221   : > { %v1783_v31 = vadd.f32 %v1707_v13, %v4725_v34  ;;  %v3104_v13 = vld [vmem:[%s3462_s29 + $0x172] sm:$0xff] }
 0x222   : > { %2719 = vst.msk [vmem:[%s4368_s12 + $0x40] sm:$0xff] %vm2710_vm2, %v2686_v61  ;;  %v2341_v59 = vadd.f32 %v2263_v16, %v2063_v57 }
 0x223   : > { %v2544_v0 = vpop.f32.mrf.mxu0  ;;  %3135 = vmatmul.msk.f32.gmra.mxu1 %vm264_vm1, %v3101_v18  ;;  %v3170_v18 = vld [vmem:[%s3462_s29 + $0x188] sm:$0xff] }
 0x224   : > { %v2619_v55 = vadd.f32 %v2541_v45, %v2341_v59  ;;  %3201 = vmatmul.msk.f32.gmra.mxu2 %vm264_vm1, %v3167_v56 }
 0x225   : > { %3267 = vmatmul.msk.f32.gmra.mxu3 %vm264_vm1, %v3233_v11 }
 0x226   : > { %3333 = vmatmul.msk.f32.gmra.mxu0 %vm264_vm1, %v4131_v8  ;;  %v2655_v49 = vadd.f32 %v4352_v43, %v2619_v55 }
 0x227   : > { %v1988_v50 = vpop.f32.mrf.mxu2 }
 0x228   : > { %v2687_v5 = vmax.f32 %v2655_v49, 0.0  ;;  %v2064_v35 = vadd.f32 %v1988_v50, %v1783_v31  ;;  %v2266_v58 = vpop.f32.mrf.mxu3  ;;  %v1710_v63 = vpop.f32.mrf.mxu1 }
 0x229   : > { %v1784_v60 = vadd.f32 %v1710_v63, %v4726_v44 }
 0x22a   : > { %2720 = vst.msk [vmem:[%s4368_s12 + $0x48] sm:$0xff] %vm2710_vm2, %v2687_v5  ;;  %v2342_v26 = vadd.f32 %v2266_v58, %v2064_v35  ;;  %v3171_v58 = vld [vmem:[%s3462_s29 + $0x198] sm:$0xff] }
 0x22b   : > { %v2547_v38 = vpop.f32.mrf.mxu0  ;;  %3136 = vmatmul.msk.f32.gmra.mxu1 %vm264_vm1, %v3102_v32  ;;  %v3237_v32 = vld [vmem:[%s3462_s29 + $0x199] sm:$0xff] }
 0x22c   : > { %v2620_v8 = vadd.f32 %v2544_v0, %v2342_v26  ;;  %3202 = vmatmul.msk.f32.gmra.mxu2 %vm264_vm1, %v3168_v47  ;;  %v4728_v0 = vld [vmem:[#allocation44_spill] sm:$0xff] }
 0x22d   : > { %3268 = vmatmul.msk.f32.gmra.mxu3 %vm264_vm1, %v3234_v22 }
 0x22e   : > { %3334 = vmatmul.msk.f32.gmra.mxu0 %vm264_vm1, %v4147_v3  ;;  %v2656_v30 = vadd.f32 %v4352_v43, %v2620_v8 }
 0x22f   : > { %v1991_v4 = vpop.f32.mrf.mxu2 }
 0x230   : > { %v2688_v46 = vmax.f32 %v2656_v30, 0.0  ;;  %v2065_v14 = vadd.f32 %v1991_v4, %v1784_v60  ;;  %v2269_v27 = vpop.f32.mrf.mxu3  ;;  %v1713_v40 = vpop.f32.mrf.mxu1 }
 0x231   : > { %v1785_v29 = vadd.f32 %v1713_v40, %v4727_v1 }
 0x232   : > { %2721 = vst.msk [vmem:[%s4368_s12 + $0x50] sm:$0xff] %vm2710_vm2, %v2688_v46  ;;  %v2343_v7 = vadd.f32 %v2269_v27, %v2065_v14  ;;  %v3172_v46 = vld [vmem:[%s3462_s29 + $0x1a0] sm:$0xff] }
 0x233   : > { %v2550_v45 = vpop.f32.mrf.mxu0  ;;  %3137 = vmatmul.msk.f32.gmra.mxu1 %vm264_vm1, %v3103_v6  ;;  %v3238_v27 = vld [vmem:[%s3462_s29 + $0x1a1] sm:$0xff] }
 0x234   : > { %v2621_v3 = vadd.f32 %v2547_v38, %v2343_v7  ;;  %3203 = vmatmul.msk.f32.gmra.mxu2 %vm264_vm1, %v3169_v12  ;;  %v3304_v6 = vld [vmem:[%s3462_s29 + $0x1a2] sm:$0xff] }
 0x235   : > { %3269 = vmatmul.msk.f32.gmra.mxu3 %vm264_vm1, %v4135_v28  ;;  %v3302_v28 = vld [vmem:[%s3462_s29 + $0x18a] sm:$0xff] }
 0x236   : > { %3335 = vmatmul.msk.f32.gmra.mxu0 %vm264_vm1, %v3301_v54  ;;  %v2657_v21 = vadd.f32 %v4352_v43, %v2621_v3 }
 0x237   : > { %v1994_v36 = vpop.f32.mrf.mxu2 }
 0x238   : > { %v2689_v62 = vmax.f32 %v2657_v21, 0.0  ;;  %v2066_v61 = vadd.f32 %v1994_v36, %v1785_v29  ;;  %v2272_v57 = vpop.f32.mrf.mxu3  ;;  %v1716_v16 = vpop.f32.mrf.mxu1 }
 0x239   : > { %v1786_v55 = vadd.f32 %v1716_v16, %v4728_v0 }
 0x23a   : > { %2722 = vst.msk [vmem:[%s4368_s12 + $0x58] sm:$0xff] %vm2710_vm2, %v2689_v62  ;;  %v2344_v56 = vadd.f32 %v2272_v57, %v2066_v61 }
 0x23b   : > { %v2553_v59 = vpop.f32.mrf.mxu0  ;;  %3138 = vmatmul.msk.f32.gmra.mxu1 %vm264_vm1, %v3104_v13 }
 0x23c   : > { %v2622_v11 = vadd.f32 %v2550_v45, %v2344_v56  ;;  %3204 = vmatmul.msk.f32.gmra.mxu2 %vm264_vm1, %v3170_v18 }
 0x23d   : > { %3270 = vmatmul.msk.f32.gmra.mxu3 %vm264_vm1, %v4151_v15  ;;  %v3303_v15 = vld [vmem:[%s3462_s29 + $0x19a] sm:$0xff] }
 0x23e   : > { %3336 = vmatmul.msk.f32.gmra.mxu0 %vm264_vm1, %v3302_v28  ;;  %v2658_v34 = vadd.f32 %v4352_v43, %v2622_v11 }
 0x23f   : > { %v1997_v31 = vpop.f32.mrf.mxu2 }
 0x240   : > { %v2690_v49 = vmax.f32 %v2658_v34, 0.0  ;;  %v2067_v50 = vadd.f32 %v1997_v31, %v1786_v55  ;;  %v2275_v5 = vpop.f32.mrf.mxu3  ;;  %v1719_v35 = vpop.f32.mrf.mxu1 }
 0x241   : > { %v1787_v22 = vadd.f32 %v1719_v35, %v4153_v33 }
 0x242   : > { %2723 = vst.msk [vmem:[%s4368_s12 + $0x60] sm:$0xff] %vm2710_vm2, %v2690_v49  ;;  %v2345_v63 = vadd.f32 %v2275_v5, %v2067_v50 }
 0x243   : > { %v2556_v47 = vpop.f32.mrf.mxu0  ;;  %3139 = vmatmul.msk.f32.gmra.mxu1 %vm264_vm1, %v3301_v54 }
 0x244   : > { %v2623_v26 = vadd.f32 %v2553_v59, %v2345_v63  ;;  %3205 = vmatmul.msk.f32.gmra.mxu2 %vm264_vm1, %v3171_v58 }
 0x245   : > { %3271 = vmatmul.msk.f32.gmra.mxu3 %vm264_vm1, %v3237_v32 }
 0x246   : > { %3337 = vmatmul.msk.f32.gmra.mxu0 %vm264_vm1, %v3303_v15  ;;  %v2659_v38 = vadd.f32 %v4352_v43, %v2623_v26 }
 0x247   : > { %v2000_v8 = vpop.f32.mrf.mxu2 }
 0x248   : > { %v2691_v44 = vmax.f32 %v2659_v38, 0.0  ;;  %v2068_v60 = vadd.f32 %v2000_v8, %v1787_v22  ;;  %v2278_v30 = vpop.f32.mrf.mxu3  ;;  %v1722_v4 = vpop.f32.mrf.mxu1 }
 0x249   : > { %v1788_v33 = vadd.f32 %v1722_v4, %v4162_v10 }
 0x24a   : > { %2724 = vst.msk [vmem:[%s4368_s12 + $0x68] sm:$0xff] %vm2710_vm2, %v2691_v44  ;;  %v2346_v14 = vadd.f32 %v2278_v30, %v2068_v60 }
 0x24b   : > { %v2559_v40 = vpop.f32.mrf.mxu0  ;;  %3140 = vmatmul.msk.f32.gmra.mxu1 %vm264_vm1, %v3302_v28 }
 0x24c   : > { %v2624_v12 = vadd.f32 %v2556_v47, %v2346_v14  ;;  %3206 = vmatmul.msk.f32.gmra.mxu2 %vm264_vm1, %v3172_v46 }
 0x24d   : > { %3272 = vmatmul.msk.f32.gmra.mxu3 %vm264_vm1, %v3238_v27 }
 0x24e   : > { %3338 = vmatmul.msk.f32.gmra.mxu0 %vm264_vm1, %v3304_v6  ;;  %v2660_v7 = vadd.f32 %v4352_v43, %v2624_v12 }
 0x24f   : > { %v2003_v45 = vpop.f32.mrf.mxu2 }
 0x250   : > { %v2692_v54 = vmax.f32 %v2660_v7, 0.0  ;;  %v2069_v3 = vadd.f32 %v2003_v45, %v1788_v33  ;;  %v2281_v1 = vpop.f32.mrf.mxu3  ;;  %v1725_v29 = vpop.f32.mrf.mxu1 }
 0x251   : > { %v1789_v61 = vadd.f32 %v1725_v29, %v4173_v25 }
 0x252   : > { %2725 = vst.msk [vmem:[%s4368_s12 + $0x70] sm:$0xff] %vm2710_vm2, %v2692_v54  ;;  %v2347_v21 = vadd.f32 %v2281_v1, %v2069_v3 }
 0x253   : > { %v2562_v36 = vpop.f32.mrf.mxu0 }
 0x254   : > { %v2625_v62 = vadd.f32 %v2559_v40, %v2347_v21 }
 0x256   : > { %v2661_v57 = vadd.f32 %v4352_v43, %v2625_v62 }
 0x257   : > { %v2006_v16 = vpop.f32.mrf.mxu2 }
 0x258   : > { %v2693_v10 = vmax.f32 %v2661_v57, 0.0  ;;  %v2070_v13 = vadd.f32 %v2006_v16, %v1789_v61  ;;  %v2284_v18 = vpop.f32.mrf.mxu3  ;;  %v1728_v56 = vpop.f32.mrf.mxu1 }
 0x259   : > { %v1790_v0 = vadd.f32 %v1728_v56, %v4184_v9 }
 0x25a   : > { %2726 = vst.msk [vmem:[%s4368_s12 + $0x78] sm:$0xff] %vm2710_vm2, %v2693_v10  ;;  %v2348_v59 = vadd.f32 %v2284_v18, %v2070_v13 }
 0x25b   : > { %v2565_v28 = vpop.f32.mrf.mxu0 }
 0x25c   : > { %v2626_v11 = vadd.f32 %v2562_v36, %v2348_v59 }
 0x25e   : > { %v2662_v55 = vadd.f32 %v4352_v43, %v2626_v11 }
 0x25f   : > { %v2009_v34 = vpop.f32.mrf.mxu2 }
 0x260   : > { %v2694_v25 = vmax.f32 %v2662_v55, 0.0  ;;  %v2071_v31 = vadd.f32 %v2009_v34, %v1790_v0  ;;  %v2287_v49 = vpop.f32.mrf.mxu3  ;;  %v1731_v50 = vpop.f32.mrf.mxu1 }
 0x261   : > { %v1791_v63 = vadd.f32 %v1731_v50, %v4195_v42 }
 0x262   : > { %2727 = vst.msk [vmem:[%s4368_s12 + $0x80] sm:$0xff] %vm2710_vm2, %v2694_v25  ;;  %v2349_v5 = vadd.f32 %v2287_v49, %v2071_v31 }
 0x263   : > { %v2568_v35 = vpop.f32.mrf.mxu0 }
 0x264   : > { %v2627_v58 = vadd.f32 %v2565_v28, %v2349_v5 }
 0x266   : > { %v2663_v32 = vadd.f32 %v4352_v43, %v2627_v58 }
 0x267   : > { %v2012_v47 = vpop.f32.mrf.mxu2 }
 0x268   : > { %v2695_v9 = vmax.f32 %v2663_v32, 0.0  ;;  %v2072_v15 = vadd.f32 %v2012_v47, %v1791_v63  ;;  %v2290_v26 = vpop.f32.mrf.mxu3  ;;  %v1734_v22 = vpop.f32.mrf.mxu1 }
 0x269   : > { %v1792_v60 = vadd.f32 %v1734_v22, %v4207_v53 }
 0x26a   : > { %2728 = vst.msk [vmem:[%s4368_s12 + $0x88] sm:$0xff] %vm2710_vm2, %v2695_v9  ;;  %v2350_v38 = vadd.f32 %v2290_v26, %v2072_v15 }
 0x26b   : > { %v2571_v8 = vpop.f32.mrf.mxu0 }
 0x26c   : > { %v2628_v44 = vadd.f32 %v2568_v35, %v2350_v38 }
 0x26e   : > { %v2664_v30 = vadd.f32 %v4352_v43, %v2628_v44 }
 0x26f   : > { %v2015_v4 = vpop.f32.mrf.mxu2 }
 0x270   : > { %v2696_v42 = vmax.f32 %v2664_v30, 0.0  ;;  %v2073_v46 = vadd.f32 %v2015_v4, %v1792_v60  ;;  %v2293_v14 = vpop.f32.mrf.mxu3  ;;  %v1737_v27 = vpop.f32.mrf.mxu1 }
 0x271   : > { %v1793_v33 = vadd.f32 %v1737_v27, %v4218_v41 }
 0x272   : > { %2729 = vst.msk [vmem:[%s4368_s12 + $0x90] sm:$0xff] %vm2710_vm2, %v2696_v42  ;;  %v2351_v40 = vadd.f32 %v2293_v14, %v2073_v46 }
 0x273   : > { %v2574_v6 = vpop.f32.mrf.mxu0 }
 0x274   : > { %v2629_v12 = vadd.f32 %v2571_v8, %v2351_v40 }
 0x276   : > { %v2665_v7 = vadd.f32 %v4352_v43, %v2629_v12 }
 0x277   : > { %v2018_v45 = vpop.f32.mrf.mxu2 }
 0x278   : > { %v2697_v53 = vmax.f32 %v2665_v7, 0.0  ;;  %v2074_v54 = vadd.f32 %v2018_v45, %v1793_v33  ;;  %v2296_v3 = vpop.f32.mrf.mxu3  ;;  %v1740_v1 = vpop.f32.mrf.mxu1 }
 0x279   : > { %v1794_v62 = vadd.f32 %v1740_v1, %v4229_v52 }
 0x27a   : > { %2730 = vst.msk [vmem:[%s4368_s12 + $0x98] sm:$0xff] %vm2710_vm2, %v2697_v53  ;;  %v2352_v29 = vadd.f32 %v2296_v3, %v2074_v54 }
 0x27b   : > { %v2577_v21 = vpop.f32.mrf.mxu0 }
 0x27c   : > { %v2630_v36 = vadd.f32 %v2574_v6, %v2352_v29 }
 0x27e   : > { %v2666_v61 = vadd.f32 %v4352_v43, %v2630_v36 }
 0x27f   : > { %v2021_v57 = vpop.f32.mrf.mxu2 }
 0x280   : > { %v2698_v41 = vmax.f32 %v2666_v61, 0.0  ;;  %v2075_v16 = vadd.f32 %v2021_v57, %v1794_v62  ;;  %v2299_v10 = vpop.f32.mrf.mxu3  ;;  %v1743_v13 = vpop.f32.mrf.mxu1 }
 0x281   : > { %v1795_v28 = vadd.f32 %v1743_v13, %v4240_v48 }
 0x282   : > { %2731 = vst.msk [vmem:[%s4368_s12 + $0xa0] sm:$0xff] %vm2710_vm2, %v2698_v41  ;;  %v2353_v18 = vadd.f32 %v2299_v10, %v2075_v16 }
 0x283   : > { %v2580_v56 = vpop.f32.mrf.mxu0 }
 0x284   : > { %v2631_v59 = vadd.f32 %v2577_v21, %v2353_v18 }
 0x286   : > { %v2667_v11 = vadd.f32 %v4352_v43, %v2631_v59 }
 0x287   : > { %v2024_v0 = vpop.f32.mrf.mxu2 }
 0x288   : > { %v2699_v52 = vmax.f32 %v2667_v11, 0.0  ;;  %v2076_v55 = vadd.f32 %v2024_v0, %v1795_v28  ;;  %v2302_v34 = vpop.f32.mrf.mxu3  ;;  %v1746_v25 = vpop.f32.mrf.mxu1 }
 0x289   : > { %v1796_v5 = vadd.f32 %v1746_v25, %v4251_v19 }
 0x28a   : > { %2732 = vst.msk [vmem:[%s4368_s12 + $0xa8] sm:$0xff] %vm2710_vm2, %v2699_v52  ;;  %v2354_v31 = vadd.f32 %v2302_v34, %v2076_v55 }
 0x28b   : > { %v2583_v49 = vpop.f32.mrf.mxu0 }
 0x28c   : > { %v2632_v50 = vadd.f32 %v2580_v56, %v2354_v31 }
 0x28e   : > { %v2668_v35 = vadd.f32 %v4352_v43, %v2632_v50 }
 0x28f   : > { %v2027_v58 = vpop.f32.mrf.mxu2 }
 0x290   : > { %v2700_v48 = vmax.f32 %v2668_v35, 0.0  ;;  %v2077_v63 = vadd.f32 %v2027_v58, %v1796_v5  ;;  %v2305_v32 = vpop.f32.mrf.mxu3  ;;  %v1749_v47 = vpop.f32.mrf.mxu1 }
 0x291   : > { %v1797_v22 = vadd.f32 %v1749_v47, %v4262_v24 }
 0x292   : > { %2733 = vst.msk [vmem:[%s4368_s12 + $0xb0] sm:$0xff] %vm2710_vm2, %v2700_v48  ;;  %v2355_v9 = vadd.f32 %v2305_v32, %v2077_v63 }
 0x293   : > { %v2586_v15 = vpop.f32.mrf.mxu0 }
 0x294   : > { %v2633_v26 = vadd.f32 %v2583_v49, %v2355_v9 }
 0x296   : > { %v2669_v38 = vadd.f32 %v4352_v43, %v2633_v26 }
 0x297   : > { %v2030_v8 = vpop.f32.mrf.mxu2 }
 0x298   : > { %v2701_v19 = vmax.f32 %v2669_v38, 0.0  ;;  %v2078_v44 = vadd.f32 %v2030_v8, %v1797_v22  ;;  %v2308_v60 = vpop.f32.mrf.mxu3  ;;  %v1752_v30 = vpop.f32.mrf.mxu1 }
 0x299   : > { %v1798_v14 = vadd.f32 %v1752_v30, %v4273_v20 }
 0x29a   : > { %2734 = vst.msk [vmem:[%s4368_s12 + $0xb8] sm:$0xff] %vm2710_vm2, %v2701_v19  ;;  %v2356_v4 = vadd.f32 %v2308_v60, %v2078_v44 }
 0x29b   : > { %v2589_v42 = vpop.f32.mrf.mxu0 }
 0x29c   : > { %v2634_v46 = vadd.f32 %v2586_v15, %v2356_v4 }
 0x29e   : > { %v2670_v27 = vadd.f32 %v4352_v43, %v2634_v46 }
 0x29f   : > { %v2033_v40 = vpop.f32.mrf.mxu2 }
 0x2a0   : > { %v2702_v24 = vmax.f32 %v2670_v27, 0.0  ;;  %v2079_v6 = vadd.f32 %v2033_v40, %v1798_v14  ;;  %v2311_v12 = vpop.f32.mrf.mxu3  ;;  %v1755_v33 = vpop.f32.mrf.mxu1 }
 0x2a1   : > { %v1799_v54 = vadd.f32 %v1755_v33, %v4284_v17 }
 0x2a2   : > { %2735 = vst.msk [vmem:[%s4368_s12 + $0xc0] sm:$0xff] %vm2710_vm2, %v2702_v24  ;;  %v2357_v7 = vadd.f32 %v2311_v12, %v2079_v6 }
 0x2a3   : > { %v2592_v45 = vpop.f32.mrf.mxu0 }
 0x2a4   : > { %v2635_v53 = vadd.f32 %v2589_v42, %v2357_v7 }
 0x2a6   : > { %v2671_v3 = vadd.f32 %v4352_v43, %v2635_v53 }
 0x2a7   : > { %v2036_v1 = vpop.f32.mrf.mxu2 }
 0x2a8   : > { %v2703_v20 = vmax.f32 %v2671_v3, 0.0  ;;  %v2080_v29 = vadd.f32 %v2036_v1, %v1799_v54  ;;  %v2314_v21 = vpop.f32.mrf.mxu3  ;;  %v1758_v36 = vpop.f32.mrf.mxu1 }
 0x2a9   : > { %v1800_v41 = vadd.f32 %v1758_v36, %v4295_v51 }
 0x2aa   : > { %2736 = vst.msk [vmem:[%s4368_s12 + $0xc8] sm:$0xff] %vm2710_vm2, %v2703_v20  ;;  %v2358_v62 = vadd.f32 %v2314_v21, %v2080_v29 }
 0x2ab   : > { %v2595_v61 = vpop.f32.mrf.mxu0 }
 0x2ac   : > { %v2636_v57 = vadd.f32 %v2592_v45, %v2358_v62 }
 0x2ae   : > { %v2672_v16 = vadd.f32 %v4352_v43, %v2636_v57 }
 0x2af   : > { %v2039_v10 = vpop.f32.mrf.mxu2 }
 0x2b0   : > { %v2704_v17 = vmax.f32 %v2672_v16, 0.0  ;;  %v2081_v13 = vadd.f32 %v2039_v10, %v1800_v41  ;;  %v2317_v18 = vpop.f32.mrf.mxu3  ;;  %v1761_v56 = vpop.f32.mrf.mxu1 }
 0x2b1   : > { %v1801_v0 = vadd.f32 %v1761_v56, %v4306_v39 }
 0x2b2   : > { %2737 = vst.msk [vmem:[%s4368_s12 + $0xd0] sm:$0xff] %vm2710_vm2, %v2704_v17  ;;  %v2359_v59 = vadd.f32 %v2317_v18, %v2081_v13 }
 0x2b3   : > { %v2598_v28 = vpop.f32.mrf.mxu0 }
 0x2b4   : > { %v2637_v11 = vadd.f32 %v2595_v61, %v2359_v59 }
 0x2b6   : > { %v2673_v52 = vadd.f32 %v4352_v43, %v2637_v11 }
 0x2b7   : > { %v2042_v55 = vpop.f32.mrf.mxu2 }
 0x2b8   : > { %v2705_v51 = vmax.f32 %v2673_v52, 0.0  ;;  %v2082_v34 = vadd.f32 %v2042_v55, %v1801_v0  ;;  %v2320_v25 = vpop.f32.mrf.mxu3  ;;  %v1764_v31 = vpop.f32.mrf.mxu1 }
 0x2b9   : > { %v1802_v35 = vadd.f32 %v1764_v31, %v4317_v37 }
 0x2ba   : > { %2738 = vst.msk [vmem:[%s4368_s12 + $0xd8] sm:$0xff] %vm2710_vm2, %v2705_v51  ;;  %v2360_v49 = vadd.f32 %v2320_v25, %v2082_v34 }
 0x2bb   : > { %v2601_v5 = vpop.f32.mrf.mxu0 }
 0x2bc   : > { %v2638_v50 = vadd.f32 %v2598_v28, %v2360_v49 }
 0x2be   : > { %v2674_v58 = vadd.f32 %v4352_v43, %v2638_v50 }
 0x2bf   : > { %v2045_v48 = vpop.f32.mrf.mxu2 }
 0x2c0   : > { %v2706_v39 = vmax.f32 %v2674_v58, 0.0  ;;  %v2083_v63 = vadd.f32 %v2045_v48, %v1802_v35  ;;  %v2323_v32 = vpop.f32.mrf.mxu3  ;;  %v1767_v47 = vpop.f32.mrf.mxu1 }
 0x2c1   : > { %v1803_v26 = vadd.f32 %v1767_v47, %v4328_v23 }
 0x2c2   : > { %2739 = vst.msk [vmem:[%s4368_s12 + $0xe0] sm:$0xff] %vm2710_vm2, %v2706_v39  ;;  %v2361_v9 = vadd.f32 %v2323_v32, %v2083_v63 }
 0x2c3   : > { %v2604_v8 = vpop.f32.mrf.mxu0 }
 0x2c4   : > { %v2639_v15 = vadd.f32 %v2601_v5, %v2361_v9 }
 0x2c6   : > { %v2675_v22 = vadd.f32 %v4352_v43, %v2639_v15 }
 0x2c7   : > { %v2048_v38 = vpop.f32.mrf.mxu2 }
 0x2c8   : > { %v2707_v37 = vmax.f32 %v2675_v22, 0.0  ;;  %v2084_v19 = vadd.f32 %v2048_v38, %v1803_v26  ;;  %v2326_v44 = vpop.f32.mrf.mxu3  ;;  %v1770_v30 = vpop.f32.mrf.mxu1 }
 0x2c9   : > { %v1804_v42 = vadd.f32 %v1770_v30, %v4339_v2 }
 0x2ca   : > { %2740 = vst.msk [vmem:[%s4368_s12 + $0xe8] sm:$0xff] %vm2710_vm2, %v2707_v37  ;;  %v2362_v60 = vadd.f32 %v2326_v44, %v2084_v19 }
 0x2cb   : > { %v2607_v24 = vpop.f32.mrf.mxu0 }
 0x2cc   : > { %v2640_v4 = vadd.f32 %v2604_v8, %v2362_v60 }
 0x2ce   : > { %v2676_v46 = vadd.f32 %v4352_v43, %v2640_v4 }
 0x2cf   : > { %v2051_v14 = vpop.f32.mrf.mxu2 }
 0x2d0   : > { %v2708_v23 = vmax.f32 %v2676_v46, 0.0  ;;  %v2085_v27 = vadd.f32 %v2051_v14, %v1804_v42  ;;  %v2329_v40 = vpop.f32.mrf.mxu3 }
 0x2d2   : > { %2741 = vst.msk [vmem:[%s4368_s12 + $0xf0] sm:$0xff] %vm2710_vm2, %v2708_v23  ;;  %v2363_v6 = vadd.f32 %v2329_v40, %v2085_v27 }
 0x2d4   : > { %v2641_v12 = vadd.f32 %v2607_v24, %v2363_v6 }
 0x2d6   : > { %v2677_v33 = vadd.f32 %v4352_v43, %v2641_v12 }
 0x2d8   : > { %v2709_v7 = vmax.f32 %v2677_v33, 0.0 }
 0x2da   : > { %2742 = vst.msk [vmem:[%s4368_s12 + $0xf8] sm:$0xff] %vm2710_vm2, %v2709_v7 }
 0x2db PF: > { %s13_s14 = sadd.s32 1, %s3393_s14   ;;  %s4729_s12 = smov %s3389_s13 }
 0x2dc   : > { %p10_p5 = scmp.ge.s32.totalorder %s13_s14, 4   ;;  %s4730_s13 = smov %s4732_s15 }
 0x2de   :  { %12 = sbr.rel (!%p10_p5) target bundleno = 2 (0x2), region = 73 }

</bundles_post_ra>
